<compile_context>
chip_gen: v7x
topology: tpu7x:2x2x1
jax: 0.10.0
libtpu: 0.0.40
codegen_flags: <defaults>
</compile_context>

<pallas_src>
import functools
import math

import jax
import jax.numpy as jnp
from jax.experimental import pallas as pl
from jax.experimental.pallas import tpu as pltpu

# ----------------------------- config ---------------------------------------
N_HEAD = 4
D_MODEL = 32
D_FF = 64
LN_EPS = 1e-5

# Row indices inside the packed vector-parameter array (see _pack_params).
(VROW_LN1_G, VROW_LN1_B, VROW_LN2_G, VROW_LN2_B, VROW_LN3_G, VROW_LN3_B,
 VROW_SA_BQKV, VROW_SA_BO, VROW_CA_BQ, VROW_CA_BKV, VROW_CA_BO,
 VROW_FF_B1, VROW_FF_B2) = range(13)
N_VROWS = 13


# ----------------------------- kernel ---------------------------------------
def decoder_layer_kernel(*refs, B, S, Sm, n_head, has_tgt_mask, has_src_mask,
                         compute_dtype):
    it = iter(refs)
    x_ref = next(it)                      # (B*S, D)   f32
    mem_ref = next(it)                    # (B*Sm, D)  f32
    tmask_ref = next(it) if has_tgt_mask else None   # (S, S)
    smask_ref = next(it) if has_src_mask else None   # (S, Sm)
    vec_ref = next(it)                    # (N_VROWS, W) packed vector params
    sa_wqkv_ref = next(it)                # (D, 3D)  (Q columns pre-scaled)
    sa_wo_ref = next(it)                  # (D, D)
    ca_wq_ref = next(it)                  # (D, D)   (pre-scaled)
    ca_wkv_ref = next(it)                 # (D, 2D)
    ca_wo_ref = next(it)                  # (D, D)
    ff_w1_ref = next(it)                  # (D, d_ff)
    ff_w2_ref = next(it)                  # (d_ff, D)
    o_ref = next(it)                      # (B*S, D)

    D = x_ref.shape[-1]
    d_ff = ff_w1_ref.shape[-1]
    dh = D // n_head
    cd = compute_dtype

    x = x_ref[...]
    mem = mem_ref[...]
    vec = vec_ref[...]
    tmask = tmask_ref[...] if has_tgt_mask else None
    smask = smask_ref[...] if has_src_mask else None

    def ln(v, grow, brow):
        # Single-pass LayerNorm: mean and mean-of-squares are independent
        # cross-lane reductions (one fewer serial XLU dependency). f32 only.
        g = vec[grow:grow + 1, :D]
        b = vec[brow:brow + 1, :D]
        mu = jnp.mean(v, axis=-1, keepdims=True)
        ms = jnp.mean(v * v, axis=-1, keepdims=True)
        var = ms - mu * mu
        return (v - mu) * jax.lax.rsqrt(var + LN_EPS) * g + b

    def mm(a, b):                          # MXU matmul, f32 accumulation
        return jnp.dot(a.astype(cd), b.astype(cd),
                       preferred_element_type=jnp.float32)

    def bmm(eq, a, b):                     # batched contraction, f32 accum
        return jnp.einsum(eq, a.astype(cd), b.astype(cd),
                          preferred_element_type=jnp.float32)

    def attend(q2, kv2, add_mask, wo, bo, s_q, s_kv):
        # q2: (B*s_q, D); kv2: (B*s_kv, 2D) laid out as [K | V].
        # Scale 1/sqrt(dh) is already folded into the Q projection.
        q3 = q2.reshape(B, s_q, D)
        kv3 = kv2.reshape(B, s_kv, 2 * D)

        # Per-head score matmuls, stacked along the sublane (query) axis so
        # the whole softmax chain runs ONCE over a (B, n_head*s_q, s_kv)
        # slab (8-row blocks -> tile-aligned concat/slices).
        scores = []
        for h in range(n_head):            # static unroll over heads
            qh = q3[:, :, h * dh:(h + 1) * dh]           # (B, s_q, dh)
            kh = kv3[:, :, h * dh:(h + 1) * dh]          # (B, s_kv, dh)
            scores.append(bmm("bqd,bkd->bqk", qh, kh))   # (B, s_q, s_kv) f32
        s = jnp.concatenate(scores, axis=1)              # (B, H*s_q, s_kv)

        if add_mask is not None:
            # Materialize the additive mask once per attend() call (JAX does
            # not CSE broadcast_in_dim; the old code re-broadcast it 4x).
            mask_slab = jnp.concatenate([add_mask] * n_head, axis=0)
            s = s + mask_slab[None, :, :]                # f32 add, one pass

        s = s - jnp.max(s, axis=-1, keepdims=True)
        p = jnp.exp(s)
        p = p * pl.reciprocal(jnp.sum(p, axis=-1, keepdims=True), approx=True)

        # Per-head context matmuls on 8-sublane-aligned slices of p; lane-
        # concat the dh context slabs (all D=32 lanes fit one tile) and fold
        # heads back with a SINGLE (B*s_q, D) x (D, D) W_o matmul.
        ctxs = []
        for h in range(n_head):
            ph = p[:, h * s_q:(h + 1) * s_q, :]                  # (B, s_q, s_kv)
            vh = kv3[:, :, D + h * dh:D + (h + 1) * dh]          # (B, s_kv, dh)
            ctxs.append(bmm("bqk,bkd->bqd", ph, vh))             # (B, s_q, dh)
        ctx = jnp.concatenate(ctxs, axis=-1).reshape(B * s_q, D)
        return mm(ctx, wo) + bo

    # ---- block 1: LN -> self-attention (fused QKV) -> residual ----
    xn = ln(x, VROW_LN1_G, VROW_LN1_B)
    qkv = mm(xn, sa_wqkv_ref[...]) + vec[VROW_SA_BQKV:VROW_SA_BQKV + 1, :3 * D]
    sa = attend(qkv[:, :D], qkv[:, D:], tmask, sa_wo_ref[...],
                vec[VROW_SA_BO:VROW_SA_BO + 1, :D], S, S)
    x = xn + sa            # residual onto normalized x (matches spec module)

    # ---- block 2: LN -> cross-attention (fused KV from memory) -> residual --
    xn = ln(x, VROW_LN2_G, VROW_LN2_B)
    q = mm(xn, ca_wq_ref[...]) + vec[VROW_CA_BQ:VROW_CA_BQ + 1, :D]
    kv = mm(mem, ca_wkv_ref[...]) + vec[VROW_CA_BKV:VROW_CA_BKV + 1, :2 * D]
    ca = attend(q, kv, smask, ca_wo_ref[...],
                vec[VROW_CA_BO:VROW_CA_BO + 1, :D], S, Sm)
    x = xn + ca

    # ---- block 3: LN -> position-wise FFN -> residual ----
    xn = ln(x, VROW_LN3_G, VROW_LN3_B)
    h1 = mm(xn, ff_w1_ref[...]) + vec[VROW_FF_B1:VROW_FF_B1 + 1, :d_ff]
    h1 = jnp.maximum(h1, 0.0)
    ff = mm(h1, ff_w2_ref[...]) + vec[VROW_FF_B2:VROW_FF_B2 + 1, :D]
    x = xn + ff

    o_ref[...] = x.astype(o_ref.dtype)


# ------------------------- parameter packing ---------------------------------
def _pack_params(params, n_head, compute_dtype):
    """Fuse QKV / KV weights, fold the 1/sqrt(d_head) scale into Q, and pack
    all small vector parameters into one (N_VROWS, W) array."""
    d_model = params["sa_wq"].shape[0]
    d_ff = params["ff_w1"].shape[1]
    scale = 1.0 / math.sqrt(d_model // n_head)

    sa_wqkv = jnp.concatenate(
        [params["sa_wq"] * scale, params["sa_wk"], params["sa_wv"]], axis=1)
    sa_bqkv = jnp.concatenate(
        [params["sa_bq"] * scale, params["sa_bk"], params["sa_bv"]], axis=1)
    ca_wq = params["ca_wq"] * scale
    ca_bq = params["ca_bq"] * scale
    ca_wkv = jnp.concatenate([params["ca_wk"], params["ca_wv"]], axis=1)
    ca_bkv = jnp.concatenate([params["ca_bk"], params["ca_bv"]], axis=1)

    width = max(3 * d_model, d_ff)

    def row(v):
        v = jnp.asarray(v, jnp.float32).reshape(1, -1)
        return jnp.pad(v, ((0, 0), (0, width - v.shape[1])))

    vec = jnp.concatenate([
        row(params["ln1_g"]), row(params["ln1_b"]),
        row(params["ln2_g"]), row(params["ln2_b"]),
        row(params["ln3_g"]), row(params["ln3_b"]),
        row(sa_bqkv), row(params["sa_bo"]),
        row(ca_bq), row(ca_bkv), row(params["ca_bo"]),
        row(params["ff_b1"]), row(params["ff_b2"]),
    ], axis=0)                                   # (N_VROWS, width)

    weights = [sa_wqkv, params["sa_wo"], ca_wq, ca_wkv, params["ca_wo"],
               params["ff_w1"], params["ff_w2"]]
    weights = [w.astype(compute_dtype) for w in weights]
    return vec, weights


# ----------------------------- wrapper ---------------------------------------
def decoder_layer(x, memory, params, tgt_mask=None, src_mask=None,
                  n_head=N_HEAD, compute_dtype=jnp.float32):
    B, S, D = x.shape
    Sm = memory.shape[1]
    assert D % n_head == 0
    # TODO(synk): pad S/Sm (and extend the additive masks with -1e9 columns)
    # for sequence lengths that are not sublane multiples.
    assert S % 8 == 0 and Sm % 8 == 0, "S and Sm must be multiples of 8"

    vec, weights = _pack_params(params, n_head, compute_dtype)

    x2d = x.reshape(B * S, D).astype(jnp.float32)
    mem2d = memory.reshape(B * Sm, D).astype(jnp.float32)

    inputs = [x2d, mem2d]
    if tgt_mask is not None:
        inputs.append(tgt_mask.astype(jnp.float32))
    if src_mask is not None:
        inputs.append(src_mask.astype(jnp.float32))
    inputs.append(vec)
    inputs.extend(weights)

    kernel = functools.partial(
        decoder_layer_kernel,
        B=B, S=S, Sm=Sm, n_head=n_head,
        has_tgt_mask=tgt_mask is not None,
        has_src_mask=src_mask is not None,
        compute_dtype=compute_dtype,
    )

    # Single invocation (grid=()): every operand pinned to VMEM for the whole
    # kernel; output aliases the x buffer (no extra HBM output allocation).
    vmem_spec = pl.BlockSpec(memory_space=pltpu.MemorySpace.VMEM)
    out2d = pl.pallas_call(
        kernel,
        out_shape=jax.ShapeDtypeStruct((B * S, D), jnp.float32),
        in_specs=[vmem_spec] * len(inputs),
        out_specs=vmem_spec,
        input_output_aliases={0: 0},
    )(*inputs)
    return out2d.reshape(B, S, D).astype(x.dtype)


# ------------------------- pure-JAX reference ---------------------------------
def _ref_decoder_layer(x, memory, params, tgt_mask=None, src_mask=None,
                       n_head=N_HEAD):
    def ln_(v, g, b):
        mu = jnp.mean(v, axis=-1, keepdims=True)
        var = jnp.mean((v - mu) ** 2, axis=-1, keepdims=True)
        return (v - mu) / jnp.sqrt(var + LN_EPS) * g + b

    def mha(xq, xkv, mask, wq, bq, wk, bk, wv, bv, wo, bo):
        B, S, D = xq.shape
        Sk = xkv.shape[1]
        dh = D // n_head
        q = (xq @ wq + bq).reshape(B, S, n_head, dh).transpose(0, 2, 1, 3)
        k = (xkv @ wk + bk).reshape(B, Sk, n_head, dh).transpose(0, 2, 1, 3)
        v = (xkv @ wv + bv).reshape(B, Sk, n_head, dh).transpose(0, 2, 1, 3)
        s = jnp.einsum("bhqd,bhkd->bhqk", q, k) / math.sqrt(dh)
        if mask is not None:
            s = s + mask
        p = jax.nn.softmax(s, axis=-1)
        ctx = jnp.einsum("bhqk,bhkd->bhqd", p, v)
        ctx = ctx.transpose(0, 2, 1, 3).reshape(B, S, D)
        return ctx @ wo + bo

    p = params
    xn = ln_(x, p["ln1_g"][0], p["ln1_b"][0])
    x = xn + mha(xn, xn, tgt_mask, p["sa_wq"], p["sa_bq"][0], p["sa_wk"],
                 p["sa_bk"][0], p["sa_wv"], p["sa_bv"][0], p["sa_wo"],
                 p["sa_bo"][0])
    xn = ln_(x, p["ln2_g"][0], p["ln2_b"][0])
    x = xn + mha(xn, memory, src_mask, p["ca_wq"], p["ca_bq"][0], p["ca_wk"],
                 p["ca_bk"][0], p["ca_wv"], p["ca_bv"][0], p["ca_wo"],
                 p["ca_bo"][0])
    xn = ln_(x, p["ln3_g"][0], p["ln3_b"][0])
    h = jnp.maximum(xn @ p["ff_w1"] + p["ff_b1"][0], 0.0)
    x = xn + (h @ p["ff_w2"] + p["ff_b2"][0])
    return x


# ----------------------------- params / main ----------------------------------
def make_params(key, d_model, d_ff):
    params = {}

    def nrm(k, shape):
        return (0.02 * jax.random.normal(k, shape)).astype(jnp.float32)

    keys = jax.random.split(key, 40)
    ki = iter(keys)
    for name in ["ln1", "ln2", "ln3"]:
        params[f"{name}_g"] = 1.0 + nrm(next(ki), (1, d_model))
        params[f"{name}_b"] = nrm(next(ki), (1, d_model))
    for pre in ["sa", "ca"]:
        for proj in ["q", "k", "v", "o"]:
            params[f"{pre}_w{proj}"] = nrm(next(ki), (d_model, d_model))
            params[f"{pre}_b{proj}"] = nrm(next(ki), (1, d_model))
    params["ff_w1"] = nrm(next(ki), (d_model, d_ff))
    params["ff_b1"] = nrm(next(ki), (1, d_ff))
    params["ff_w2"] = nrm(next(ki), (d_ff, d_model))
    params["ff_b2"] = nrm(next(ki), (1, d_model))
    return params


if __name__ == "__main__":
    B, S, Sm = 2, 8, 16
    key = jax.random.PRNGKey(0)
    k_x, k_m, k_p = jax.random.split(key, 3)

    x = jax.random.normal(k_x, (B, S, D_MODEL), jnp.float32)
    memory = jax.random.normal(k_m, (B, Sm, D_MODEL), jnp.float32)
    params = make_params(k_p, D_MODEL, D_FF)

    causal = jnp.tril(jnp.ones((S, S), jnp.float32))
    tgt_mask = jnp.where(causal > 0, 0.0, -1e9).astype(jnp.float32)

    # Case 1: causal tgt mask, no src mask (src-mask add skipped in-kernel).
    out = decoder_layer(x, memory, params, tgt_mask=tgt_mask, src_mask=None)
    out = jax.block_until_ready(out)
    ref = _ref_decoder_layer(x, memory, params, tgt_mask=tgt_mask, src_mask=None)
    assert out.shape == (B, S, D_MODEL)
    assert jnp.allclose(out, ref, atol=1e-3, rtol=1e-3), "mismatch (no src mask)"

    # Case 2: both masks present.
    src_mask = jnp.where(
        jax.random.uniform(jax.random.PRNGKey(1), (S, Sm)) > 0.2, 0.0, -1e9
    ).astype(jnp.float32)
    out2 = jax.block_until_ready(
        decoder_layer(x, memory, params, tgt_mask=tgt_mask, src_mask=src_mask))
    ref2 = _ref_decoder_layer(x, memory, params, tgt_mask=tgt_mask,
                              src_mask=src_mask)
    assert jnp.allclose(out2, ref2, atol=1e-3, rtol=1e-3), "mismatch (with src mask)"

    print("KERNEL_OK")
</pallas_src>

<mosaic_0001>
module attributes {stable_mosaic.version = 11 : i64} {
  func.func @decoder_layer_kernel(%arg0: memref<16x32xf32, #tpu.memory_space<vmem>>, %arg1: memref<32x32xf32, #tpu.memory_space<vmem>>, %arg2: memref<8x8xf32, #tpu.memory_space<vmem>>, %arg3: memref<13x96xf32, #tpu.memory_space<vmem>>, %arg4: memref<32x96xf32, #tpu.memory_space<vmem>>, %arg5: memref<32x32xf32, #tpu.memory_space<vmem>>, %arg6: memref<32x32xf32, #tpu.memory_space<vmem>>, %arg7: memref<32x64xf32, #tpu.memory_space<vmem>>, %arg8: memref<32x32xf32, #tpu.memory_space<vmem>>, %arg9: memref<32x64xf32, #tpu.memory_space<vmem>>, %arg10: memref<64x32xf32, #tpu.memory_space<vmem>>, %arg11: memref<16x32xf32, #tpu.memory_space<vmem>>) attributes {dimension_semantics = [], scalar_prefetch = 0 : i64, scratch_operands = 0 : i64, tpu.core_type = #tpu.core_type<tc>} {
    %c0 = arith.constant 0 : index
    %c0_0 = arith.constant 0 : index
    %0 = vector.load %arg0[%c0, %c0_0] : memref<16x32xf32, #tpu.memory_space<vmem>>, vector<16x32xf32>
    %c0_1 = arith.constant 0 : index
    %c0_2 = arith.constant 0 : index
    %1 = vector.load %arg1[%c0_1, %c0_2] : memref<32x32xf32, #tpu.memory_space<vmem>>, vector<32x32xf32>
    %c0_3 = arith.constant 0 : index
    %c0_4 = arith.constant 0 : index
    %2 = vector.load %arg3[%c0_3, %c0_4] : memref<13x96xf32, #tpu.memory_space<vmem>>, vector<13x96xf32>
    %c0_5 = arith.constant 0 : index
    %c0_6 = arith.constant 0 : index
    %3 = vector.load %arg2[%c0_5, %c0_6] : memref<8x8xf32, #tpu.memory_space<vmem>>, vector<8x8xf32>
    %4 = vector.extract_strided_slice %2 {offsets = [0, 0], sizes = [1, 32], strides = [1, 1]} : vector<13x96xf32> to vector<1x32xf32>
    %5 = vector.extract_strided_slice %2 {offsets = [1, 0], sizes = [1, 32], strides = [1, 1]} : vector<13x96xf32> to vector<1x32xf32>
    %cst = arith.constant dense<0.000000e+00> : vector<16xf32>
    %6 = vector.multi_reduction <add>, %0, %cst [1] : vector<16x32xf32> to vector<16xf32>
    %7 = vector.shape_cast %6 : vector<16xf32> to vector<16x1xf32>
    %cst_7 = arith.constant 3.200000e+01 : f32
    %8 = vector.broadcast %cst_7 : f32 to vector<16x1xf32>
    %9 = arith.divf %7, %8 : vector<16x1xf32>
    %10 = arith.mulf %0, %0 : vector<16x32xf32>
    %cst_8 = arith.constant dense<0.000000e+00> : vector<16xf32>
    %11 = vector.multi_reduction <add>, %10, %cst_8 [1] : vector<16x32xf32> to vector<16xf32>
    %12 = vector.shape_cast %11 : vector<16xf32> to vector<16x1xf32>
    %cst_9 = arith.constant 3.200000e+01 : f32
    %13 = vector.broadcast %cst_9 : f32 to vector<16x1xf32>
    %14 = arith.divf %12, %13 : vector<16x1xf32>
    %15 = arith.mulf %9, %9 : vector<16x1xf32>
    %16 = arith.subf %14, %15 : vector<16x1xf32>
    %17 = vector.broadcast %9 : vector<16x1xf32> to vector<16x32xf32>
    %18 = arith.subf %0, %17 : vector<16x32xf32>
    %cst_10 = arith.constant 9.99999974E-6 : f32
    %19 = vector.broadcast %cst_10 : f32 to vector<16x1xf32>
    %20 = arith.addf %16, %19 : vector<16x1xf32>
    %21 = math.rsqrt %20 : vector<16x1xf32>
    %22 = vector.broadcast %21 : vector<16x1xf32> to vector<16x32xf32>
    %23 = arith.mulf %18, %22 : vector<16x32xf32>
    %24 = vector.broadcast %4 : vector<1x32xf32> to vector<16x32xf32>
    %25 = arith.mulf %23, %24 : vector<16x32xf32>
    %26 = vector.broadcast %5 : vector<1x32xf32> to vector<16x32xf32>
    %27 = arith.addf %25, %26 : vector<16x32xf32>
    %c0_11 = arith.constant 0 : index
    %c0_12 = arith.constant 0 : index
    %28 = vector.load %arg4[%c0_11, %c0_12] : memref<32x96xf32, #tpu.memory_space<vmem>>, vector<32x96xf32>
    %cst_13 = arith.constant dense<0.000000e+00> : vector<16x96xf32>
    %29 = tpu.matmul %27, %28, %cst_13 {dimension_numbers = #tpu.dot_dimension_numbers<[1], [0], [0], [1], [0, 0, 1, 1], [], []>} : vector<16x32xf32>, vector<32x96xf32>, vector<16x96xf32> -> vector<16x96xf32>
    %30 = vector.extract_strided_slice %2 {offsets = [6, 0], sizes = [1, 96], strides = [1, 1]} : vector<13x96xf32> to vector<1x96xf32>
    %31 = vector.broadcast %30 : vector<1x96xf32> to vector<16x96xf32>
    %32 = arith.addf %29, %31 : vector<16x96xf32>
    %33 = vector.extract_strided_slice %32 {offsets = [0, 0], sizes = [16, 32], strides = [1, 1]} : vector<16x96xf32> to vector<16x32xf32>
    %34 = vector.extract_strided_slice %32 {offsets = [0, 32], sizes = [16, 64], strides = [1, 1]} : vector<16x96xf32> to vector<16x64xf32>
    %c0_14 = arith.constant 0 : index
    %c0_15 = arith.constant 0 : index
    %35 = vector.load %arg5[%c0_14, %c0_15] : memref<32x32xf32, #tpu.memory_space<vmem>>, vector<32x32xf32>
    %36 = vector.extract_strided_slice %2 {offsets = [7, 0], sizes = [1, 32], strides = [1, 1]} : vector<13x96xf32> to vector<1x32xf32>
    %37 = vector.shape_cast %33 : vector<16x32xf32> to vector<2x8x32xf32>
    %38 = vector.shape_cast %34 : vector<16x64xf32> to vector<2x8x64xf32>
    %39 = vector.extract_strided_slice %37 {offsets = [0, 0, 0], sizes = [2, 8, 8], strides = [1, 1, 1]} : vector<2x8x32xf32> to vector<2x8x8xf32>
    %40 = vector.extract_strided_slice %38 {offsets = [0, 0, 0], sizes = [2, 8, 8], strides = [1, 1, 1]} : vector<2x8x64xf32> to vector<2x8x8xf32>
    "tpu.trace_start"() <{level = 10 : i32, message = "bqd,bkd->bqk"}> : () -> ()
    %cst_16 = arith.constant dense<0.000000e+00> : vector<2x8x8xf32>
    %41 = tpu.matmul %39, %40, %cst_16 {dimension_numbers = #tpu.dot_dimension_numbers<[2], [2], [1], [1], [0, 0, 0, 1, 1, 1], [0], [0]>} : vector<2x8x8xf32>, vector<2x8x8xf32>, vector<2x8x8xf32> -> vector<2x8x8xf32>
    "tpu.trace_stop"() : () -> ()
    %42 = vector.extract_strided_slice %37 {offsets = [0, 0, 8], sizes = [2, 8, 8], strides = [1, 1, 1]} : vector<2x8x32xf32> to vector<2x8x8xf32>
    %43 = vector.extract_strided_slice %38 {offsets = [0, 0, 8], sizes = [2, 8, 8], strides = [1, 1, 1]} : vector<2x8x64xf32> to vector<2x8x8xf32>
    "tpu.trace_start"() <{level = 10 : i32, message = "bqd,bkd->bqk"}> : () -> ()
    %cst_17 = arith.constant dense<0.000000e+00> : vector<2x8x8xf32>
    %44 = tpu.matmul %42, %43, %cst_17 {dimension_numbers = #tpu.dot_dimension_numbers<[2], [2], [1], [1], [0, 0, 0, 1, 1, 1], [0], [0]>} : vector<2x8x8xf32>, vector<2x8x8xf32>, vector<2x8x8xf32> -> vector<2x8x8xf32>
    "tpu.trace_stop"() : () -> ()
    %45 = vector.extract_strided_slice %37 {offsets = [0, 0, 16], sizes = [2, 8, 8], strides = [1, 1, 1]} : vector<2x8x32xf32> to vector<2x8x8xf32>
    %46 = vector.extract_strided_slice %38 {offsets = [0, 0, 16], sizes = [2, 8, 8], strides = [1, 1, 1]} : vector<2x8x64xf32> to vector<2x8x8xf32>
    "tpu.trace_start"() <{level = 10 : i32, message = "bqd,bkd->bqk"}> : () -> ()
    %cst_18 = arith.constant dense<0.000000e+00> : vector<2x8x8xf32>
    %47 = tpu.matmul %45, %46, %cst_18 {dimension_numbers = #tpu.dot_dimension_numbers<[2], [2], [1], [1], [0, 0, 0, 1, 1, 1], [0], [0]>} : vector<2x8x8xf32>, vector<2x8x8xf32>, vector<2x8x8xf32> -> vector<2x8x8xf32>
    "tpu.trace_stop"() : () -> ()
    %48 = vector.extract_strided_slice %37 {offsets = [0, 0, 24], sizes = [2, 8, 8], strides = [1, 1, 1]} : vector<2x8x32xf32> to vector<2x8x8xf32>
    %49 = vector.extract_strided_slice %38 {offsets = [0, 0, 24], sizes = [2, 8, 8], strides = [1, 1, 1]} : vector<2x8x64xf32> to vector<2x8x8xf32>
    "tpu.trace_start"() <{level = 10 : i32, message = "bqd,bkd->bqk"}> : () -> ()
    %cst_19 = arith.constant dense<0.000000e+00> : vector<2x8x8xf32>
    %50 = tpu.matmul %48, %49, %cst_19 {dimension_numbers = #tpu.dot_dimension_numbers<[2], [2], [1], [1], [0, 0, 0, 1, 1, 1], [0], [0]>} : vector<2x8x8xf32>, vector<2x8x8xf32>, vector<2x8x8xf32> -> vector<2x8x8xf32>
    "tpu.trace_stop"() : () -> ()
    %51 = tpu.concatenate %41, %44, %47, %50 in 1 : vector<2x8x8xf32>, vector<2x8x8xf32>, vector<2x8x8xf32>, vector<2x8x8xf32> -> vector<2x32x8xf32>
    %52 = tpu.concatenate %3, %3, %3, %3 in 0 : vector<8x8xf32>, vector<8x8xf32>, vector<8x8xf32>, vector<8x8xf32> -> vector<32x8xf32>
    %53 = vector.shape_cast %52 : vector<32x8xf32> to vector<1x32x8xf32>
    %54 = vector.broadcast %53 : vector<1x32x8xf32> to vector<2x32x8xf32>
    %55 = arith.addf %51, %54 : vector<2x32x8xf32>
    %cst_20 = arith.constant dense<0xFF800000> : vector<2x32xf32>
    %56 = vector.multi_reduction <maximumf>, %55, %cst_20 [2] : vector<2x32x8xf32> to vector<2x32xf32>
    %57 = vector.shape_cast %56 : vector<2x32xf32> to vector<2x32x1xf32>
    %58 = vector.broadcast %57 : vector<2x32x1xf32> to vector<2x32x8xf32>
    %59 = arith.subf %55, %58 : vector<2x32x8xf32>
    %60 = math.exp %59 : vector<2x32x8xf32>
    %cst_21 = arith.constant dense<0.000000e+00> : vector<2x32xf32>
    %61 = vector.multi_reduction <add>, %60, %cst_21 [2] : vector<2x32x8xf32> to vector<2x32xf32>
    %62 = vector.shape_cast %61 : vector<2x32xf32> to vector<2x32x1xf32>
    %63 = tpu.reciprocal %62 {approx = true} : vector<2x32x1xf32> -> vector<2x32x1xf32>
    %64 = vector.broadcast %63 : vector<2x32x1xf32> to vector<2x32x8xf32>
    %65 = arith.mulf %60, %64 : vector<2x32x8xf32>
    %66 = vector.extract_strided_slice %65 {offsets = [0, 0, 0], sizes = [2, 8, 8], strides = [1, 1, 1]} : vector<2x32x8xf32> to vector<2x8x8xf32>
    %67 = vector.extract_strided_slice %38 {offsets = [0, 0, 32], sizes = [2, 8, 8], strides = [1, 1, 1]} : vector<2x8x64xf32> to vector<2x8x8xf32>
    "tpu.trace_start"() <{level = 10 : i32, message = "bqk,bkd->bqd"}> : () -> ()
    %cst_22 = arith.constant dense<0.000000e+00> : vector<2x8x8xf32>
    %68 = tpu.matmul %66, %67, %cst_22 {dimension_numbers = #tpu.dot_dimension_numbers<[2], [1], [1], [2], [0, 0, 0, 1, 1, 2], [0], [0]>} : vector<2x8x8xf32>, vector<2x8x8xf32>, vector<2x8x8xf32> -> vector<2x8x8xf32>
    "tpu.trace_stop"() : () -> ()
    %69 = vector.extract_strided_slice %65 {offsets = [0, 8, 0], sizes = [2, 8, 8], strides = [1, 1, 1]} : vector<2x32x8xf32> to vector<2x8x8xf32>
    %70 = vector.extract_strided_slice %38 {offsets = [0, 0, 40], sizes = [2, 8, 8], strides = [1, 1, 1]} : vector<2x8x64xf32> to vector<2x8x8xf32>
    "tpu.trace_start"() <{level = 10 : i32, message = "bqk,bkd->bqd"}> : () -> ()
    %cst_23 = arith.constant dense<0.000000e+00> : vector<2x8x8xf32>
    %71 = tpu.matmul %69, %70, %cst_23 {dimension_numbers = #tpu.dot_dimension_numbers<[2], [1], [1], [2], [0, 0, 0, 1, 1, 2], [0], [0]>} : vector<2x8x8xf32>, vector<2x8x8xf32>, vector<2x8x8xf32> -> vector<2x8x8xf32>
    "tpu.trace_stop"() : () -> ()
    %72 = vector.extract_strided_slice %65 {offsets = [0, 16, 0], sizes = [2, 8, 8], strides = [1, 1, 1]} : vector<2x32x8xf32> to vector<2x8x8xf32>
    %73 = vector.extract_strided_slice %38 {offsets = [0, 0, 48], sizes = [2, 8, 8], strides = [1, 1, 1]} : vector<2x8x64xf32> to vector<2x8x8xf32>
    "tpu.trace_start"() <{level = 10 : i32, message = "bqk,bkd->bqd"}> : () -> ()
    %cst_24 = arith.constant dense<0.000000e+00> : vector<2x8x8xf32>
    %74 = tpu.matmul %72, %73, %cst_24 {dimension_numbers = #tpu.dot_dimension_numbers<[2], [1], [1], [2], [0, 0, 0, 1, 1, 2], [0], [0]>} : vector<2x8x8xf32>, vector<2x8x8xf32>, vector<2x8x8xf32> -> vector<2x8x8xf32>
    "tpu.trace_stop"() : () -> ()
    %75 = vector.extract_strided_slice %65 {offsets = [0, 24, 0], sizes = [2, 8, 8], strides = [1, 1, 1]} : vector<2x32x8xf32> to vector<2x8x8xf32>
    %76 = vector.extract_strided_slice %38 {offsets = [0, 0, 56], sizes = [2, 8, 8], strides = [1, 1, 1]} : vector<2x8x64xf32> to vector<2x8x8xf32>
    "tpu.trace_start"() <{level = 10 : i32, message = "bqk,bkd->bqd"}> : () -> ()
    %cst_25 = arith.constant dense<0.000000e+00> : vector<2x8x8xf32>
    %77 = tpu.matmul %75, %76, %cst_25 {dimension_numbers = #tpu.dot_dimension_numbers<[2], [1], [1], [2], [0, 0, 0, 1, 1, 2], [0], [0]>} : vector<2x8x8xf32>, vector<2x8x8xf32>, vector<2x8x8xf32> -> vector<2x8x8xf32>
    "tpu.trace_stop"() : () -> ()
    %78 = tpu.concatenate %68, %71, %74, %77 in 2 : vector<2x8x8xf32>, vector<2x8x8xf32>, vector<2x8x8xf32>, vector<2x8x8xf32> -> vector<2x8x32xf32>
    %79 = vector.shape_cast %78 : vector<2x8x32xf32> to vector<16x32xf32>
    %cst_26 = arith.constant dense<0.000000e+00> : vector<16x32xf32>
    %80 = tpu.matmul %79, %35, %cst_26 {dimension_numbers = #tpu.dot_dimension_numbers<[1], [0], [0], [1], [0, 0, 1, 1], [], []>} : vector<16x32xf32>, vector<32x32xf32>, vector<16x32xf32> -> vector<16x32xf32>
    %81 = vector.broadcast %36 : vector<1x32xf32> to vector<16x32xf32>
    %82 = arith.addf %80, %81 : vector<16x32xf32>
    %83 = arith.addf %27, %82 : vector<16x32xf32>
    %84 = vector.extract_strided_slice %2 {offsets = [2, 0], sizes = [1, 32], strides = [1, 1]} : vector<13x96xf32> to vector<1x32xf32>
    %85 = vector.extract_strided_slice %2 {offsets = [3, 0], sizes = [1, 32], strides = [1, 1]} : vector<13x96xf32> to vector<1x32xf32>
    %cst_27 = arith.constant dense<0.000000e+00> : vector<16xf32>
    %86 = vector.multi_reduction <add>, %83, %cst_27 [1] : vector<16x32xf32> to vector<16xf32>
    %87 = vector.shape_cast %86 : vector<16xf32> to vector<16x1xf32>
    %cst_28 = arith.constant 3.200000e+01 : f32
    %88 = vector.broadcast %cst_28 : f32 to vector<16x1xf32>
    %89 = arith.divf %87, %88 : vector<16x1xf32>
    %90 = arith.mulf %83, %83 : vector<16x32xf32>
    %cst_29 = arith.constant dense<0.000000e+00> : vector<16xf32>
    %91 = vector.multi_reduction <add>, %90, %cst_29 [1] : vector<16x32xf32> to vector<16xf32>
    %92 = vector.shape_cast %91 : vector<16xf32> to vector<16x1xf32>
    %cst_30 = arith.constant 3.200000e+01 : f32
    %93 = vector.broadcast %cst_30 : f32 to vector<16x1xf32>
    %94 = arith.divf %92, %93 : vector<16x1xf32>
    %95 = arith.mulf %89, %89 : vector<16x1xf32>
    %96 = arith.subf %94, %95 : vector<16x1xf32>
    %97 = vector.broadcast %89 : vector<16x1xf32> to vector<16x32xf32>
    %98 = arith.subf %83, %97 : vector<16x32xf32>
    %cst_31 = arith.constant 9.99999974E-6 : f32
    %99 = vector.broadcast %cst_31 : f32 to vector<16x1xf32>
    %100 = arith.addf %96, %99 : vector<16x1xf32>
    %101 = math.rsqrt %100 : vector<16x1xf32>
    %102 = vector.broadcast %101 : vector<16x1xf32> to vector<16x32xf32>
    %103 = arith.mulf %98, %102 : vector<16x32xf32>
    %104 = vector.broadcast %84 : vector<1x32xf32> to vector<16x32xf32>
    %105 = arith.mulf %103, %104 : vector<16x32xf32>
    %106 = vector.broadcast %85 : vector<1x32xf32> to vector<16x32xf32>
    %107 = arith.addf %105, %106 : vector<16x32xf32>
    %c0_32 = arith.constant 0 : index
    %c0_33 = arith.constant 0 : index
    %108 = vector.load %arg6[%c0_32, %c0_33] : memref<32x32xf32, #tpu.memory_space<vmem>>, vector<32x32xf32>
    %cst_34 = arith.constant dense<0.000000e+00> : vector<16x32xf32>
    %109 = tpu.matmul %107, %108, %cst_34 {dimension_numbers = #tpu.dot_dimension_numbers<[1], [0], [0], [1], [0, 0, 1, 1], [], []>} : vector<16x32xf32>, vector<32x32xf32>, vector<16x32xf32> -> vector<16x32xf32>
    %110 = vector.extract_strided_slice %2 {offsets = [8, 0], sizes = [1, 32], strides = [1, 1]} : vector<13x96xf32> to vector<1x32xf32>
    %111 = vector.broadcast %110 : vector<1x32xf32> to vector<16x32xf32>
    %112 = arith.addf %109, %111 : vector<16x32xf32>
    %c0_35 = arith.constant 0 : index
    %c0_36 = arith.constant 0 : index
    %113 = vector.load %arg7[%c0_35, %c0_36] : memref<32x64xf32, #tpu.memory_space<vmem>>, vector<32x64xf32>
    %cst_37 = arith.constant dense<0.000000e+00> : vector<32x64xf32>
    %114 = tpu.matmul %1, %113, %cst_37 {dimension_numbers = #tpu.dot_dimension_numbers<[1], [0], [0], [1], [0, 0, 1, 1], [], []>} : vector<32x32xf32>, vector<32x64xf32>, vector<32x64xf32> -> vector<32x64xf32>
    %115 = vector.extract_strided_slice %2 {offsets = [9, 0], sizes = [1, 64], strides = [1, 1]} : vector<13x96xf32> to vector<1x64xf32>
    %116 = vector.broadcast %115 : vector<1x64xf32> to vector<32x64xf32>
    %117 = arith.addf %114, %116 : vector<32x64xf32>
    %c0_38 = arith.constant 0 : index
    %c0_39 = arith.constant 0 : index
    %118 = vector.load %arg8[%c0_38, %c0_39] : memref<32x32xf32, #tpu.memory_space<vmem>>, vector<32x32xf32>
    %119 = vector.extract_strided_slice %2 {offsets = [10, 0], sizes = [1, 32], strides = [1, 1]} : vector<13x96xf32> to vector<1x32xf32>
    %120 = vector.shape_cast %112 : vector<16x32xf32> to vector<2x8x32xf32>
    %121 = vector.shape_cast %117 : vector<32x64xf32> to vector<2x16x64xf32>
    %122 = vector.extract_strided_slice %120 {offsets = [0, 0, 0], sizes = [2, 8, 8], strides = [1, 1, 1]} : vector<2x8x32xf32> to vector<2x8x8xf32>
    %123 = vector.extract_strided_slice %121 {offsets = [0, 0, 0], sizes = [2, 16, 8], strides = [1, 1, 1]} : vector<2x16x64xf32> to vector<2x16x8xf32>
    "tpu.trace_start"() <{level = 10 : i32, message = "bqd,bkd->bqk"}> : () -> ()
    %cst_40 = arith.constant dense<0.000000e+00> : vector<2x8x16xf32>
    %124 = tpu.matmul %122, %123, %cst_40 {dimension_numbers = #tpu.dot_dimension_numbers<[2], [2], [1], [1], [0, 0, 0, 1, 1, 1], [0], [0]>} : vector<2x8x8xf32>, vector<2x16x8xf32>, vector<2x8x16xf32> -> vector<2x8x16xf32>
    "tpu.trace_stop"() : () -> ()
    %125 = vector.extract_strided_slice %120 {offsets = [0, 0, 8], sizes = [2, 8, 8], strides = [1, 1, 1]} : vector<2x8x32xf32> to vector<2x8x8xf32>
    %126 = vector.extract_strided_slice %121 {offsets = [0, 0, 8], sizes = [2, 16, 8], strides = [1, 1, 1]} : vector<2x16x64xf32> to vector<2x16x8xf32>
    "tpu.trace_start"() <{level = 10 : i32, message = "bqd,bkd->bqk"}> : () -> ()
    %cst_41 = arith.constant dense<0.000000e+00> : vector<2x8x16xf32>
    %127 = tpu.matmul %125, %126, %cst_41 {dimension_numbers = #tpu.dot_dimension_numbers<[2], [2], [1], [1], [0, 0, 0, 1, 1, 1], [0], [0]>} : vector<2x8x8xf32>, vector<2x16x8xf32>, vector<2x8x16xf32> -> vector<2x8x16xf32>
    "tpu.trace_stop"() : () -> ()
    %128 = vector.extract_strided_slice %120 {offsets = [0, 0, 16], sizes = [2, 8, 8], strides = [1, 1, 1]} : vector<2x8x32xf32> to vector<2x8x8xf32>
    %129 = vector.extract_strided_slice %121 {offsets = [0, 0, 16], sizes = [2, 16, 8], strides = [1, 1, 1]} : vector<2x16x64xf32> to vector<2x16x8xf32>
    "tpu.trace_start"() <{level = 10 : i32, message = "bqd,bkd->bqk"}> : () -> ()
    %cst_42 = arith.constant dense<0.000000e+00> : vector<2x8x16xf32>
    %130 = tpu.matmul %128, %129, %cst_42 {dimension_numbers = #tpu.dot_dimension_numbers<[2], [2], [1], [1], [0, 0, 0, 1, 1, 1], [0], [0]>} : vector<2x8x8xf32>, vector<2x16x8xf32>, vector<2x8x16xf32> -> vector<2x8x16xf32>
    "tpu.trace_stop"() : () -> ()
    %131 = vector.extract_strided_slice %120 {offsets = [0, 0, 24], sizes = [2, 8, 8], strides = [1, 1, 1]} : vector<2x8x32xf32> to vector<2x8x8xf32>
    %132 = vector.extract_strided_slice %121 {offsets = [0, 0, 24], sizes = [2, 16, 8], strides = [1, 1, 1]} : vector<2x16x64xf32> to vector<2x16x8xf32>
    "tpu.trace_start"() <{level = 10 : i32, message = "bqd,bkd->bqk"}> : () -> ()
    %cst_43 = arith.constant dense<0.000000e+00> : vector<2x8x16xf32>
    %133 = tpu.matmul %131, %132, %cst_43 {dimension_numbers = #tpu.dot_dimension_numbers<[2], [2], [1], [1], [0, 0, 0, 1, 1, 1], [0], [0]>} : vector<2x8x8xf32>, vector<2x16x8xf32>, vector<2x8x16xf32> -> vector<2x8x16xf32>
    "tpu.trace_stop"() : () -> ()
    %134 = tpu.concatenate %124, %127, %130, %133 in 1 : vector<2x8x16xf32>, vector<2x8x16xf32>, vector<2x8x16xf32>, vector<2x8x16xf32> -> vector<2x32x16xf32>
    %cst_44 = arith.constant dense<0xFF800000> : vector<2x32xf32>
    %135 = vector.multi_reduction <maximumf>, %134, %cst_44 [2] : vector<2x32x16xf32> to vector<2x32xf32>
    %136 = vector.shape_cast %135 : vector<2x32xf32> to vector<2x32x1xf32>
    %137 = vector.broadcast %136 : vector<2x32x1xf32> to vector<2x32x16xf32>
    %138 = arith.subf %134, %137 : vector<2x32x16xf32>
    %139 = math.exp %138 : vector<2x32x16xf32>
    %cst_45 = arith.constant dense<0.000000e+00> : vector<2x32xf32>
    %140 = vector.multi_reduction <add>, %139, %cst_45 [2] : vector<2x32x16xf32> to vector<2x32xf32>
    %141 = vector.shape_cast %140 : vector<2x32xf32> to vector<2x32x1xf32>
    %142 = tpu.reciprocal %141 {approx = true} : vector<2x32x1xf32> -> vector<2x32x1xf32>
    %143 = vector.broadcast %142 : vector<2x32x1xf32> to vector<2x32x16xf32>
    %144 = arith.mulf %139, %143 : vector<2x32x16xf32>
    %145 = vector.extract_strided_slice %144 {offsets = [0, 0, 0], sizes = [2, 8, 16], strides = [1, 1, 1]} : vector<2x32x16xf32> to vector<2x8x16xf32>
    %146 = vector.extract_strided_slice %121 {offsets = [0, 0, 32], sizes = [2, 16, 8], strides = [1, 1, 1]} : vector<2x16x64xf32> to vector<2x16x8xf32>
    "tpu.trace_start"() <{level = 10 : i32, message = "bqk,bkd->bqd"}> : () -> ()
    %cst_46 = arith.constant dense<0.000000e+00> : vector<2x8x8xf32>
    %147 = tpu.matmul %145, %146, %cst_46 {dimension_numbers = #tpu.dot_dimension_numbers<[2], [1], [1], [2], [0, 0, 0, 1, 1, 2], [0], [0]>} : vector<2x8x16xf32>, vector<2x16x8xf32>, vector<2x8x8xf32> -> vector<2x8x8xf32>
    "tpu.trace_stop"() : () -> ()
    %148 = vector.extract_strided_slice %144 {offsets = [0, 8, 0], sizes = [2, 8, 16], strides = [1, 1, 1]} : vector<2x32x16xf32> to vector<2x8x16xf32>
    %149 = vector.extract_strided_slice %121 {offsets = [0, 0, 40], sizes = [2, 16, 8], strides = [1, 1, 1]} : vector<2x16x64xf32> to vector<2x16x8xf32>
    "tpu.trace_start"() <{level = 10 : i32, message = "bqk,bkd->bqd"}> : () -> ()
    %cst_47 = arith.constant dense<0.000000e+00> : vector<2x8x8xf32>
    %150 = tpu.matmul %148, %149, %cst_47 {dimension_numbers = #tpu.dot_dimension_numbers<[2], [1], [1], [2], [0, 0, 0, 1, 1, 2], [0], [0]>} : vector<2x8x16xf32>, vector<2x16x8xf32>, vector<2x8x8xf32> -> vector<2x8x8xf32>
    "tpu.trace_stop"() : () -> ()
    %151 = vector.extract_strided_slice %144 {offsets = [0, 16, 0], sizes = [2, 8, 16], strides = [1, 1, 1]} : vector<2x32x16xf32> to vector<2x8x16xf32>
    %152 = vector.extract_strided_slice %121 {offsets = [0, 0, 48], sizes = [2, 16, 8], strides = [1, 1, 1]} : vector<2x16x64xf32> to vector<2x16x8xf32>
    "tpu.trace_start"() <{level = 10 : i32, message = "bqk,bkd->bqd"}> : () -> ()
    %cst_48 = arith.constant dense<0.000000e+00> : vector<2x8x8xf32>
    %153 = tpu.matmul %151, %152, %cst_48 {dimension_numbers = #tpu.dot_dimension_numbers<[2], [1], [1], [2], [0, 0, 0, 1, 1, 2], [0], [0]>} : vector<2x8x16xf32>, vector<2x16x8xf32>, vector<2x8x8xf32> -> vector<2x8x8xf32>
    "tpu.trace_stop"() : () -> ()
    %154 = vector.extract_strided_slice %144 {offsets = [0, 24, 0], sizes = [2, 8, 16], strides = [1, 1, 1]} : vector<2x32x16xf32> to vector<2x8x16xf32>
    %155 = vector.extract_strided_slice %121 {offsets = [0, 0, 56], sizes = [2, 16, 8], strides = [1, 1, 1]} : vector<2x16x64xf32> to vector<2x16x8xf32>
    "tpu.trace_start"() <{level = 10 : i32, message = "bqk,bkd->bqd"}> : () -> ()
    %cst_49 = arith.constant dense<0.000000e+00> : vector<2x8x8xf32>
    %156 = tpu.matmul %154, %155, %cst_49 {dimension_numbers = #tpu.dot_dimension_numbers<[2], [1], [1], [2], [0, 0, 0, 1, 1, 2], [0], [0]>} : vector<2x8x16xf32>, vector<2x16x8xf32>, vector<2x8x8xf32> -> vector<2x8x8xf32>
    "tpu.trace_stop"() : () -> ()
    %157 = tpu.concatenate %147, %150, %153, %156 in 2 : vector<2x8x8xf32>, vector<2x8x8xf32>, vector<2x8x8xf32>, vector<2x8x8xf32> -> vector<2x8x32xf32>
    %158 = vector.shape_cast %157 : vector<2x8x32xf32> to vector<16x32xf32>
    %cst_50 = arith.constant dense<0.000000e+00> : vector<16x32xf32>
    %159 = tpu.matmul %158, %118, %cst_50 {dimension_numbers = #tpu.dot_dimension_numbers<[1], [0], [0], [1], [0, 0, 1, 1], [], []>} : vector<16x32xf32>, vector<32x32xf32>, vector<16x32xf32> -> vector<16x32xf32>
    %160 = vector.broadcast %119 : vector<1x32xf32> to vector<16x32xf32>
    %161 = arith.addf %159, %160 : vector<16x32xf32>
    %162 = arith.addf %107, %161 : vector<16x32xf32>
    %163 = vector.extract_strided_slice %2 {offsets = [4, 0], sizes = [1, 32], strides = [1, 1]} : vector<13x96xf32> to vector<1x32xf32>
    %164 = vector.extract_strided_slice %2 {offsets = [5, 0], sizes = [1, 32], strides = [1, 1]} : vector<13x96xf32> to vector<1x32xf32>
    %cst_51 = arith.constant dense<0.000000e+00> : vector<16xf32>
    %165 = vector.multi_reduction <add>, %162, %cst_51 [1] : vector<16x32xf32> to vector<16xf32>
    %166 = vector.shape_cast %165 : vector<16xf32> to vector<16x1xf32>
    %cst_52 = arith.constant 3.200000e+01 : f32
    %167 = vector.broadcast %cst_52 : f32 to vector<16x1xf32>
    %168 = arith.divf %166, %167 : vector<16x1xf32>
    %169 = arith.mulf %162, %162 : vector<16x32xf32>
    %cst_53 = arith.constant dense<0.000000e+00> : vector<16xf32>
    %170 = vector.multi_reduction <add>, %169, %cst_53 [1] : vector<16x32xf32> to vector<16xf32>
    %171 = vector.shape_cast %170 : vector<16xf32> to vector<16x1xf32>
    %cst_54 = arith.constant 3.200000e+01 : f32
    %172 = vector.broadcast %cst_54 : f32 to vector<16x1xf32>
    %173 = arith.divf %171, %172 : vector<16x1xf32>
    %174 = arith.mulf %168, %168 : vector<16x1xf32>
    %175 = arith.subf %173, %174 : vector<16x1xf32>
    %176 = vector.broadcast %168 : vector<16x1xf32> to vector<16x32xf32>
    %177 = arith.subf %162, %176 : vector<16x32xf32>
    %cst_55 = arith.constant 9.99999974E-6 : f32
    %178 = vector.broadcast %cst_55 : f32 to vector<16x1xf32>
    %179 = arith.addf %175, %178 : vector<16x1xf32>
    %180 = math.rsqrt %179 : vector<16x1xf32>
    %181 = vector.broadcast %180 : vector<16x1xf32> to vector<16x32xf32>
    %182 = arith.mulf %177, %181 : vector<16x32xf32>
    %183 = vector.broadcast %163 : vector<1x32xf32> to vector<16x32xf32>
    %184 = arith.mulf %182, %183 : vector<16x32xf32>
    %185 = vector.broadcast %164 : vector<1x32xf32> to vector<16x32xf32>
    %186 = arith.addf %184, %185 : vector<16x32xf32>
    %c0_56 = arith.constant 0 : index
    %c0_57 = arith.constant 0 : index
    %187 = vector.load %arg9[%c0_56, %c0_57] : memref<32x64xf32, #tpu.memory_space<vmem>>, vector<32x64xf32>
    %cst_58 = arith.constant dense<0.000000e+00> : vector<16x64xf32>
    %188 = tpu.matmul %186, %187, %cst_58 {dimension_numbers = #tpu.dot_dimension_numbers<[1], [0], [0], [1], [0, 0, 1, 1], [], []>} : vector<16x32xf32>, vector<32x64xf32>, vector<16x64xf32> -> vector<16x64xf32>
    %189 = vector.extract_strided_slice %2 {offsets = [11, 0], sizes = [1, 64], strides = [1, 1]} : vector<13x96xf32> to vector<1x64xf32>
    %190 = vector.broadcast %189 : vector<1x64xf32> to vector<16x64xf32>
    %191 = arith.addf %188, %190 : vector<16x64xf32>
    %cst_59 = arith.constant 0.000000e+00 : f32
    %192 = vector.broadcast %cst_59 : f32 to vector<16x64xf32>
    %193 = arith.maximumf %191, %192 : vector<16x64xf32>
    %c0_60 = arith.constant 0 : index
    %c0_61 = arith.constant 0 : index
    %194 = vector.load %arg10[%c0_60, %c0_61] : memref<64x32xf32, #tpu.memory_space<vmem>>, vector<64x32xf32>
    %cst_62 = arith.constant dense<0.000000e+00> : vector<16x32xf32>
    %195 = tpu.matmul %193, %194, %cst_62 {dimension_numbers = #tpu.dot_dimension_numbers<[1], [0], [0], [1], [0, 0, 1, 1], [], []>} : vector<16x64xf32>, vector<64x32xf32>, vector<16x32xf32> -> vector<16x32xf32>
    %196 = vector.extract_strided_slice %2 {offsets = [12, 0], sizes = [1, 32], strides = [1, 1]} : vector<13x96xf32> to vector<1x32xf32>
    %197 = vector.broadcast %196 : vector<1x32xf32> to vector<16x32xf32>
    %198 = arith.addf %195, %197 : vector<16x32xf32>
    %199 = arith.addf %186, %198 : vector<16x32xf32>
    %c0_63 = arith.constant 0 : index
    %c0_64 = arith.constant 0 : index
    %200 = vector.load %arg11[%c0_63, %c0_64] : memref<16x32xf32, #tpu.memory_space<vmem>>, vector<16x32xf32>
    tpu.vector_store %arg11[%c0_63, %c0_64], %199 {strides = array<i32>} : memref<16x32xf32, #tpu.memory_space<vmem>>, vector<16x32xf32>,
    return
  }
}

</mosaic_0001>

<bundles_post_ra>
// kernel: tpu_custom_call.1
= control target key start
LH: loop header
LB: loop body
LE: loop exit
PB: predicated region body
PF: predicated region fallthrough
CT: control target
= control target key end

     0   :  { %16 = vsyncpa [#allocation3], 0  ;;  %s5323_s0 = inlined_call_operand.hbm [shape: f32[16,32], index: 0, kind: input, shape index: {}, may-alias: {0,11}]   ;;  %s5324_s1 = inlined_call_operand.vmem [shape: f32[32,32], index: 1, kind: input, shape index: {}]   ;;  %s5325_s2 = inlined_call_operand.hbm [shape: f32[8,8], index: 2, kind: input, shape index: {}]   ;;  %s5326_s3 = inlined_call_operand.hbm [shape: f32[13,96], index: 3, kind: input, shape index: {}]   ;;  %s5327_s4 = inlined_call_operand.vmem [shape: f32[32,96], index: 4, kind: input, shape index: {}]   ;;  %s5328_s5 = inlined_call_operand.vmem [shape: f32[32,32], index: 5, kind: input, shape index: {}]   ;;  %s5329_s6 = inlined_call_operand.hbm [shape: f32[32,32], index: 6, kind: input, shape index: {}]   ;;  %s5330_s7 = inlined_call_operand.hbm [shape: f32[32,64], index: 7, kind: input, shape index: {}]   ;;  %s5331_s8 = inlined_call_operand.hbm [shape: f32[32,32], index: 8, kind: input, shape index: {}]   ;;  %s5332_s9 = inlined_call_operand.vmem [shape: f32[32,64], index: 9, kind: input, shape index: {}]   ;;  %s5333_s10 = inlined_call_operand.vmem [shape: f32[64,32], index: 10, kind: input, shape index: {}]   ;;  %s5334_s11 = inlined_call_operand.hbm [shape: f32[16,32], index: 11, kind: output, shape index: {}, may-alias: {0,11}]  }
   0x1   :  { %17 = vsyncpa [#allocation6], 0 }
   0x2   :  { %18 = vsyncpa [#allocation9], 0 }
   0x3   :  { %19 = vsyncpa [#allocation12], 0 }
   0x4   :  { %20 = vsyncpa [#allocation4], 0  ;;  %s4625_s17 = smov [#allocation5]   ;;  %s4461_s21 = scalar_lea.hbm %s5325_s2, 128 }
   0x5   :  { %s41_s18 = sshll.u32 %s4625_s17, 4  ;;  %p4462_p0 = scmp.ne.s32.totalorder %s5325_s2, %s4461_s21  ;;  %s42_s18 = int_to_ptr.vmem [resolvable:$true] %s41_s18 }
   0x6   :  { %p4465_p1 = scmp.lt.u32.totalorder %s4461_s21, %s5325_s2 }
   0x8   :  { %p4467_p2 = pnand %p4465_p1, %p4462_p0 }
   0xa   :  { %4470 = shalt.err (!%p4467_p2)
}
   0xb   :  { %s4471_s26 = scalar_lea.vmem %s42_s18, 128  ;;  %p4476_p4 = scmp.lt.s32.totalorder %s42_s18, %s42_s18 }
   0xc   :  { %p4472_p3 = scmp.ne.s32.totalorder %s42_s18, %s4471_s26  ;;  %p4477_p5 = scmp.lt.s32.totalorder %s4471_s26, %s4471_s26 }
   0xe   :  { %p4478_p6 = por %p4477_p5, %p4476_p4 }
  0x10   :  { %p4479_p7 = pnand %p4478_p6, %p4472_p3 }
  0x12   :  { %4482 = shalt.err (!%p4479_p7)
}
  0x13   :  { %44 = dma.hbm_to_vmem [thread:$0]  %s5325_s2, 128, %s42_s18, [#allocation6]  }
  0x14   :  { %s4626_s29 = smov [#allocation8]   ;;  %s4627_s12 = smov [#allocation2]  }
  0x15   :  { %s66_s30 = sshll.u32 %s4626_s29, 4  ;;  %s26_s13 = sshll.u32 %s4627_s12, 4  ;;  %s67_s30 = int_to_ptr.vmem [resolvable:$true] %s66_s30  ;;  %s27_s13 = int_to_ptr.vmem [resolvable:$true] %s26_s13 }
  0x16   :  { %s4483_s16 = scalar_lea.hbm %s5329_s6, 512 }
  0x17   :  { %p4484_p8 = scmp.ne.s32.totalorder %s5329_s6, %s4483_s16  ;;  %p4487_p9 = scmp.lt.u32.totalorder %s4483_s16, %s5329_s6 }
  0x19   :  { %p4489_p10 = pnand %p4487_p9, %p4484_p8 }
  0x1b   :  { %4492 = shalt.err (!%p4489_p10)
}
  0x1c   :  { %s4493_s2 = scalar_lea.vmem %s67_s30, 512  ;;  %p4498_p12 = scmp.lt.s32.totalorder %s67_s30, %s67_s30 }
  0x1d   :  { %p4494_p11 = scmp.ne.s32.totalorder %s67_s30, %s4493_s2  ;;  %p4499_p13 = scmp.lt.s32.totalorder %s4493_s2, %s4493_s2 }
  0x1f   :  { %p4500_p0 = por %p4499_p13, %p4498_p12 }
  0x21   :  { %p4501_p1 = pnand %p4500_p0, %p4494_p11 }
  0x23   :  { %4504 = shalt.err (!%p4501_p1)
}
  0x24   :  { %s4628_s18 = smov 128   ;;  %s4629_s22 = smov 8  }
  0x25   :  { %72 = dma.hbm_to_vmem [thread:$0]  %s5329_s6, 512, %s67_s30, [#allocation9], %s4628_s18, %s4628_s18, %s4629_s22  }
  0x26   :  { %s4505_s27 = scalar_lea.hbm %s5323_s0, 256 }
  0x27   :  { %p4506_p2 = scmp.ne.s32.totalorder %s5323_s0, %s4505_s27  ;;  %p4509_p3 = scmp.lt.u32.totalorder %s4505_s27, %s5323_s0 }
  0x29   :  { %p4511_p4 = pnand %p4509_p3, %p4506_p2 }
  0x2b   :  { %4514 = shalt.err (!%p4511_p4)
}
  0x2c   :  { %s4515_s15 = scalar_lea.vmem %s27_s13, 256  ;;  %p4520_p6 = scmp.lt.s32.totalorder %s27_s13, %s27_s13 }
  0x2d   :  { %p4516_p5 = scmp.ne.s32.totalorder %s27_s13, %s4515_s15  ;;  %p4521_p7 = scmp.lt.s32.totalorder %s4515_s15, %s4515_s15 }
  0x2f   :  { %p4522_p8 = por %p4521_p7, %p4520_p6 }
  0x31   :  { %p4523_p9 = pnand %p4522_p8, %p4516_p5 }
  0x33   :  { %4526 = shalt.err (!%p4523_p9)
}
  0x34   :  { %32 = dma.hbm_to_vmem [thread:$0]  %s5323_s0, 256, %s27_s13, [#allocation3], %s4628_s18, %s4628_s18, %s4629_s22  }
  0x35   :  { %s4630_s16 = smov [#allocation7]   ;;  %s4631_s19 = smov [#allocation10]  }
  0x36   :  { %s50_s17 = sshll.u32 %s4630_s16, 4  ;;  %s78_s20 = sshll.u32 %s4631_s19, 4  ;;  %s51_s17 = int_to_ptr.vmem [resolvable:$true] %s50_s17  ;;  %s79_s20 = int_to_ptr.vmem [resolvable:$true] %s78_s20 }
  0x37   :  { %s4527_s23 = scalar_lea.hbm %s5326_s3, 256 }
  0x38   :  { %p4528_p10 = scmp.ne.s32.totalorder %s5326_s3, %s4527_s23  ;;  %p4531_p11 = scmp.lt.u32.totalorder %s4527_s23, %s5326_s3 }
  0x3a   :  { %p4533_p12 = pnand %p4531_p11, %p4528_p10 }
  0x3c   :  { %4536 = shalt.err (!%p4533_p12)
}
  0x3d   :  { %s4537_s0 = scalar_lea.vmem %s51_s17, 256  ;;  %p4542_p0 = scmp.lt.s32.totalorder %s51_s17, %s51_s17 }
  0x3e   :  { %p4538_p13 = scmp.ne.s32.totalorder %s51_s17, %s4537_s0  ;;  %p4543_p1 = scmp.lt.s32.totalorder %s4537_s0, %s4537_s0 }
  0x40   :  { %p4544_p2 = por %p4543_p1, %p4542_p0 }
  0x42   :  { %p4545_p3 = pnand %p4544_p2, %p4538_p13 }
  0x44   :  { %4548 = shalt.err (!%p4545_p3)
}
  0x45   :  { %56 = dma.hbm_to_vmem [thread:$0]  %s5326_s3, 256, %s51_s17, [#allocation6], %s4628_s18, %s4628_s18, %s4629_s22  }
  0x46   :  { %s4549_s14 = scalar_lea.hbm %s5330_s7, 512 }
  0x47   :  { %p4550_p4 = scmp.ne.s32.totalorder %s5330_s7, %s4549_s14  ;;  %p4553_p5 = scmp.lt.u32.totalorder %s4549_s14, %s5330_s7 }
  0x49   :  { %p4555_p6 = pnand %p4553_p5, %p4550_p4 }
  0x4b   :  { %4558 = shalt.err (!%p4555_p6)
}
  0x4c   :  { %s4559_s19 = scalar_lea.vmem %s79_s20, 512  ;;  %p4564_p8 = scmp.lt.s32.totalorder %s79_s20, %s79_s20 }
  0x4d   :  { %p4560_p7 = scmp.ne.s32.totalorder %s79_s20, %s4559_s19  ;;  %p4565_p9 = scmp.lt.s32.totalorder %s4559_s19, %s4559_s19 }
  0x4f   :  { %p4566_p10 = por %p4565_p9, %p4564_p8 }
  0x51   :  { %p4567_p11 = pnand %p4566_p10, %p4560_p7 }
  0x53   :  { %4570 = shalt.err (!%p4567_p11)
}
  0x54   :  { %84 = dma.hbm_to_vmem [thread:$0]  %s5330_s7, 512, %s79_s20, [#allocation9], %s4628_s18, %s4628_s18, %s4629_s22  }
  0x55   :  { %s4632_s21 = smov [#allocation11]   ;;  %s4571_s25 = scalar_lea.hbm %s5331_s8, 512 }
  0x56   :  { %s90_s2 = sshll.u32 %s4632_s21, 4  ;;  %p4572_p12 = scmp.ne.s32.totalorder %s5331_s8, %s4571_s25  ;;  %s91_s2 = int_to_ptr.vmem [resolvable:$true] %s90_s2 }
  0x57   :  { %p4575_p13 = scmp.lt.u32.totalorder %s4571_s25, %s5331_s8 }
  0x59   :  { %p4577_p0 = pnand %p4575_p13, %p4572_p12 }
  0x5b   :  { %4580 = shalt.err (!%p4577_p0)
}
  0x5c   :  { %s4581_s28 = scalar_lea.vmem %s91_s2, 512  ;;  %p4586_p2 = scmp.lt.s32.totalorder %s91_s2, %s91_s2 }
  0x5d   :  { %p4582_p1 = scmp.ne.s32.totalorder %s91_s2, %s4581_s28  ;;  %p4587_p3 = scmp.lt.s32.totalorder %s4581_s28, %s4581_s28 }
  0x5f   :  { %p4588_p4 = por %p4587_p3, %p4586_p2 }
  0x61   :  { %p4589_p5 = pnand %p4588_p4, %p4582_p1 }
  0x63   :  { %4592 = shalt.err (!%p4589_p5)
}
  0x64   :  { %96 = dma.hbm_to_vmem [thread:$0]  %s5331_s8, 512, %s91_s2, [#allocation12], %s4628_s18, %s4628_s18, %s4629_s22  }
  0x65   :  { %4615 = dma.done.wait [#allocation3], 256  }
  0x66   :  { %4616 = vsyncadd [#allocation3], 4294967040 }
  0x67   :  { %4617 = dma.done.wait [#allocation6], 384  }
  0x68   :  { %4618 = vsyncadd [#allocation6], 4294966912 }
  0x69   :  { %4619 = dma.done.wait [#allocation9], 1024  }
  0x6a   :  { %4620 = vsyncadd [#allocation9], 4294966272 }
  0x6b   :  { %4621 = dma.done.wait [#allocation12], 512  }
  0x6c   :  { %4622 = vsyncadd [#allocation12], 4294966784  ;;  %vm128_vm0 = vcmask 261120   ;;  %v119_v0 = vld [vmem:[#allocation2] sm:$0xff]  ;;  %v120_v1 = vld [vmem:[#allocation2 + $0x8] sm:$0xff]  ;;  %v160_v23 = vlaneseq  ;;  %v4633_v45 = vmov 0.0  }
  0x6d   :  { %v129_v2 = vsel %vm128_vm0, %v119_v0, 0.0  ;;  %v138_v3 = vmul.f32 %v119_v0, %v119_v0  ;;  %v139_v4 = vmul.f32 %v120_v1, %v120_v1  ;;  %v132_v6 = vsel %vm128_vm0, %v120_v1, 0.0  ;;  %v172_v8 = vld [vmem:[%s5327_s4] sm:$0xff]  ;;  %v173_v9 = vld [vmem:[%s5327_s4 + $0x8] sm:$0xff]  ;;  %v174_v10 = vld [vmem:[%s5327_s4 + $0x10] sm:$0xff]  ;;  %3910 = vmatprep.subr.mxu0 %v4633_v45  ;;  %s4636_s19 = smov 88  }
  0x6e   :  { %130 = vadd.xlane.f32.xlu0 %v129_v2  ;;  %v4169_v11 = vpack.c.bf16 %v173_v9, %v172_v8  ;;  %v175_v12 = vld [vmem:[%s5327_s4 + $0x18] sm:$0xff]  ;;  %v4813_v28 = vshrl.u32 %v160_v23, 7  ;;  %vm4634_vm1 = vmmov 0   ;;  %s4635_s4 = smov 96   ;;  %s4637_s3 = smov 120   ;;  %vm268_vm2 = vcmask 64512  }
  0x6f   :  { %v140_v5 = vsel %vm128_vm0, %v138_v3, 0.0  ;;  %v143_v7 = vsel %vm128_vm0, %v139_v4, 0.0  ;;  %v4173_v13 = vpack.c.bf16 %v175_v12, %v174_v10  ;;  %v4816_v31 = vld [vmem:[#allocation7] sm:$0xff]  ;;  %3912 = vmatprep.mubr.msk.f32.mxu0 %vm4634_vm1, %v4633_v45  ;;  %s4638_s17 = smov 80   ;;  %s4639_s21 = smov 112   ;;  %v127_v2 = vld [vmem:[#allocation5] sm:$0xff]  ;;  %vm5066_vm5 = vmpackc.low %vm268_vm2, %vm268_vm2 }
  0x70   :  { %141 = vadd.xlane.f32.xlu1 %v140_v5  ;;  %4170 = vmatprep.subr.bf16.mxu1 %v4169_v11  ;;  %v162_v30 = vsub.s32 0, %v4813_v28  ;;  %v168_v32 = vsub.s32 1, %v4813_v28  ;;  %v178_v46 = vsub.s32 6, %v4813_v28  ;;  %s4640_s2 = smov 72   ;;  %s4641_s23 = smov 104   ;;  %vm1618_vm3 = vcmask 130048  }
  0x71   :  { %4172 = vmatpush3.bf16.msra.mxu1 %v4169_v11  ;;  %s4642_s24 = smov 64   ;;  %s4643_s25 = smov 56   ;;  %vm1621_vm4 = vcmask 195584   ;;  %vm3583_vm6 = vcmask 523264  }
  0x72   :  { %133 = vadd.xlane.f32.xlu0 %v132_v6  ;;  %4174 = vmatprep.subr.bf16.mxu1 %v4173_v13  ;;  %v163_v34 = vrot.slane %v4816_v31, %v162_v30  ;;  %v169_v37 = vrot.slane %v4816_v31, %v168_v32  ;;  %v179_v47 = vrot.slane %v4816_v31, %v178_v46  ;;  %s4644_s26 = smov 48   ;;  %s4645_s27 = smov 40  }
  0x73   :  { %s4646_s14 = smov 16  }
  0x74   :  { %144 = vadd.xlane.f32.xlu1 %v143_v7 }
  0x75   :  { %4176 = vmatpush3.bf16.msra.mxu1 %v4173_v13 }
  0x76   :  { %3900 = vmatprep.subr.mxu1 %v4633_v45 }
  0xfb   :  { %v131_v14 = vpop.xlane.xlu0 %130 }
  0xfc   :  { %v136_v15 = vmul.f32 0.03125, %v131_v14 }
  0xfd   :  { %v142_v16 = vpop.xlane.xlu1 %141 }
  0xfe   :  { %v148_v17 = vmul.f32 %v136_v15, %v136_v15  ;;  %v146_v18 = vmul.f32 0.03125, %v142_v16  ;;  %v152_v33 = vsub.f32 %v119_v0, %v136_v15 }
  0xff   :  { %v134_v19 = vpop.xlane.xlu0 %133 }
 0x100   :  { %v150_v20 = vsub.f32 %v146_v18, %v148_v17  ;;  %v137_v21 = vmul.f32 0.03125, %v134_v19 }
 0x101   :  { %v145_v22 = vpop.xlane.xlu1 %144 }
 0x102   :  { %v154_v24 = vadd.f32 1e-05, %v150_v20  ;;  %v149_v25 = vmul.f32 %v137_v21, %v137_v21  ;;  %v147_v26 = vmul.f32 0.03125, %v145_v22  ;;  %v153_v38 = vsub.f32 %v120_v1, %v137_v21 }
 0x104   :  { %4384 = vrsqrt.f32 %v154_v24  ;;  %v151_v27 = vsub.f32 %v147_v26, %v149_v25 }
 0x106   :  { %v155_v29 = vadd.f32 1e-05, %v151_v27 }
 0x108   :  { %4386 = vrsqrt.f32 %v155_v29 }
 0x10e   :  { %v4385_v35 = vpop.eup %4384 }
 0x10f   :  { %v158_v36 = vmul.f32 %v4385_v35, %v152_v33 }
 0x111   :  { %v164_v39 = vmul.f32 %v163_v34, %v158_v36 }
 0x112   :  { %v4387_v40 = vpop.eup %4386 }
 0x113   :  { %v159_v41 = vmul.f32 %v4387_v40, %v153_v38  ;;  %v4825_v42 = vadd.f32 %v169_v37, %v164_v39 }
 0x115   :  { %v165_v43 = vmul.f32 %v163_v34, %v159_v41  ;;  %3897 = vmatprep.mubr.msk.f32.mxu1 %vm128_vm0, %v4825_v42 }
 0x117   :  { %v4829_v44 = vadd.f32 %v169_v37, %v165_v43 }
 0x119   :  { %3898 = vmatmul.mubr.msk.f32.vlgmr.msra.gmra.mrb[0].mxu1 %vm128_vm0, %v4829_v44 }
 0x11a   :  { %3902 = vmatprep.mubr.msk.f32.mxu1 %vm4634_vm1, %v4633_v45 }
 0x1ec   :  { %v3899_v48 = vpop.f32.mrb[0].mxu1 }
 0x1ed   :  { %v4841_v49 = vadd.f32 %v3899_v48, %v179_v47  ;;  %v252_v50 = vpop.f32.mrb[1].mxu1 }
 0x1ee   :  { %v4843_v51 = vadd.f32 %v252_v50, %v179_v47 }
 0x1ef   :  { %344 = vrot.lane.b32.xlu1 %v4841_v49, %s4635_s4 }
 0x1f0   :  { %266 = vrot.lane.b32.xlu0 %v4843_v51, %s4635_s4 }
 0x1f3   :  { %500 = vrot.lane.b32.xlu1 %v4841_v49, %s4636_s19 }
 0x1f4   :  { %420 = vrot.lane.b32.xlu0 %v4843_v51, %s4637_s3 }
 0x1f7   :  { %498 = vrot.lane.b32.xlu1 %v4841_v49, %s4637_s3 }
 0x1f8   :  { %578 = vrot.lane.b32.xlu0 %v4843_v51, %s4638_s17 }
 0x1fb   :  { %656 = vrot.lane.b32.xlu1 %v4841_v49, %s4638_s17 }
 0x1fc   :  { %576 = vrot.lane.b32.xlu0 %v4843_v51, %s4639_s21 }
 0x1ff   :  { %422 = vrot.lane.b32.xlu1 %v4843_v51, %s4636_s19 }
 0x200   :  { %734 = vrot.lane.b32.xlu0 %v4843_v51, %s4640_s2 }
 0x203   :  { %654 = vrot.lane.b32.xlu1 %v4841_v49, %s4639_s21 }
 0x204   :  { %732 = vrot.lane.b32.xlu0 %v4843_v51, %s4641_s23 }
 0x207   :  { %812 = vrot.lane.b32.xlu1 %v4841_v49, %s4640_s2 }
 0x20b   :  { %810 = vrot.lane.b32.xlu1 %v4841_v49, %s4641_s23 }
 0x261   :  { %v345_v52 = vpop.permute.xlu1 %344 }
 0x262   :  { %v267_v53 = vpop.permute.xlu0 %266 }
 0x263   :  { %3901 = vmatpush3.xpose.msk.msra.mxu1 %vm268_vm2, %v267_v53 }
 0x264   :  { %3905 = vmatprep.subr.mxu1 %v4633_v45 }
 0x265   :  { %v501_v54 = vpop.permute.xlu1 %500 }
 0x266   :  { %3903 = vmatmul.mubr.msk.f32.vlgmr.msra.gmra.mrb[2].mxu1 %vm268_vm2, %v4843_v51  ;;  %v421_v55 = vpop.permute.xlu0 %420 }
 0x267   :  { %3906 = vmatpush3.xpose.msk.msra.mxu1 %vm268_vm2, %v345_v52  ;;  %3907 = vmatprep.mubr.msk.f32.mxu1 %vm4634_vm1, %v4633_v45 }
 0x268   :  { %3915 = vmatprep.subr.mxu1 %v4633_v45 }
 0x269   :  { %v499_v56 = vpop.permute.xlu1 %498 }
 0x26a   :  { %3908 = vmatmul.mubr.msk.f32.vlgmr.msra.gmra.mrb[4].mxu1 %vm268_vm2, %v4841_v49  ;;  %v579_v57 = vpop.permute.xlu0 %578 }
 0x26b   :  { %3916 = vmatpush3.xpose.msk.msra.mxu1 %vm268_vm2, %v501_v54  ;;  %3917 = vmatprep.mubr.msk.f32.mxu1 %vm4634_vm1, %v4633_v45 }
 0x26c   :  { %3925 = vmatprep.subr.mxu1 %v4633_v45 }
 0x26d   :  { %v657_v58 = vpop.permute.xlu1 %656 }
 0x26e   :  { %3918 = vmatmul.mubr.msk.f32.vlgmr.msra.gmra.mrb[6].mxu1 %vm268_vm2, %v499_v56  ;;  %v577_v59 = vpop.permute.xlu0 %576 }
 0x26f   :  { %3926 = vmatpush3.xpose.msk.msra.mxu1 %vm268_vm2, %v657_v58  ;;  %3927 = vmatprep.mubr.msk.f32.mxu1 %vm4634_vm1, %v4633_v45 }
 0x270   :  { %3935 = vmatprep.subr.mxu1 %v4633_v45 }
 0x271   :  { %v423_v60 = vpop.permute.xlu1 %422 }
 0x272   :  { %3911 = vmatpush3.xpose.msk.msra.mxu0 %vm268_vm2, %v423_v60  ;;  %v735_v62 = vpop.permute.xlu0 %734 }
 0x273   :  { %3920 = vmatprep.subr.mxu0 %v4633_v45 }
 0x275   :  { %v655_v61 = vpop.permute.xlu1 %654  ;;  %3913 = vmatmul.mubr.msk.f32.vlgmr.msra.gmra.mrb[0].mxu0 %vm268_vm2, %v421_v55 }
 0x276   :  { %3921 = vmatpush3.xpose.msk.msra.mxu0 %vm268_vm2, %v579_v57  ;;  %3928 = vmatmul.mubr.msk.f32.vlgmr.msra.gmra.mrb[8].mxu1 %vm268_vm2, %v655_v61  ;;  %v733_v0 = vpop.permute.xlu0 %732 }
 0x277   :  { %3922 = vmatprep.mubr.msk.f32.mxu0 %vm4634_vm1, %v4633_v45  ;;  %3930 = vmatprep.subr.mxu0 %v4633_v45 }
 0x278   :  { %3937 = vmatprep.mubr.msk.f32.mxu1 %vm4634_vm1, %v4633_v45 }
 0x279   :  { %v813_v63 = vpop.permute.xlu1 %812  ;;  %3923 = vmatmul.mubr.msk.f32.vlgmr.msra.gmra.mrb[2].mxu0 %vm268_vm2, %v577_v59 }
 0x27a   :  { %3931 = vmatpush3.xpose.msk.msra.mxu0 %vm268_vm2, %v735_v62  ;;  %3936 = vmatpush3.xpose.msk.msra.mxu1 %vm268_vm2, %v813_v63 }
 0x27b   :  { %3932 = vmatprep.mubr.msk.f32.mxu0 %vm4634_vm1, %v4633_v45  ;;  %3945 = vmatprep.subr.mxu1 %v4633_v45 }
 0x27c   :  { %3940 = vmatprep.subr.mxu0 %v4633_v45 }
 0x27d   :  { %v811_v1 = vpop.permute.xlu1 %810  ;;  %3933 = vmatmul.mubr.msk.f32.vlgmr.msra.gmra.mrb[4].mxu0 %vm268_vm2, %v733_v0 }
 0x27e   :  { %3938 = vmatmul.mubr.msk.f32.vlgmr.msra.gmra.mrb[10].mxu1 %vm268_vm2, %v811_v1  ;;  %3942 = vmatprep.mubr.msk.f32.mxu0 %vm4634_vm1, %v4633_v45 }
 0x27f   :  { %3947 = vmatprep.mubr.msk.f32.mxu1 %vm4634_vm1, %v4633_v45 }
 0x339   :  { %v339_v3 = vpop.f32.mrb[2].mxu1 }
 0x33a   :  { %v888_v4 = vadd.f32 %v339_v3, %v127_v2  ;;  %v3904_v5 = vpop.f32.mrb[3].mxu1 }
 0x33c   :  { %v896_v6 = vsel %vm268_vm2, %v888_v4, -inf }
 0x33d   :  { %897 = vmax.xlane.f32.xlu0 %v896_v6  ;;  %v416_v7 = vpop.f32.mrb[4].mxu1 }
 0x33e   :  { %v892_v8 = vadd.f32 %v416_v7, %v127_v2  ;;  %v3909_v9 = vpop.f32.mrb[5].mxu1 }
 0x340   :  { %v908_v10 = vsel %vm268_vm2, %v892_v8, -inf }
 0x341   :  { %909 = vmax.xlane.f32.xlu1 %v908_v10  ;;  %v572_v11 = vpop.f32.mrb[6].mxu1 }
 0x342   :  { %v3919_v12 = vpop.f32.mrb[7].mxu1  ;;  %v893_v19 = vadd.f32 %v572_v11, %v127_v2 }
 0x344   :  { %v911_v25 = vsel %vm268_vm2, %v893_v19, -inf }
 0x348   :  { %v494_v13 = vpop.f32.mrb[0].mxu0 }
 0x349   :  { %v889_v14 = vadd.f32 %v494_v13, %v127_v2  ;;  %v3914_v15 = vpop.f32.mrb[1].mxu0  ;;  %v728_v16 = vpop.f32.mrb[8].mxu1 }
 0x34a   :  { %v894_v17 = vadd.f32 %v728_v16, %v127_v2  ;;  %v3929_v18 = vpop.f32.mrb[9].mxu1 }
 0x34b   :  { %v899_v20 = vsel %vm268_vm2, %v889_v14, -inf }
 0x34c   :  { %900 = vmax.xlane.f32.xlu0 %v899_v20  ;;  %v650_v21 = vpop.f32.mrb[2].mxu0  ;;  %v914_v22 = vsel %vm268_vm2, %v894_v17, -inf }
 0x34d   :  { %915 = vmax.xlane.f32.xlu1 %v914_v22  ;;  %v3924_v23 = vpop.f32.mrb[3].mxu0  ;;  %v890_v24 = vadd.f32 %v650_v21, %v127_v2 }
 0x34f   :  { %v902_v36 = vsel %vm268_vm2, %v890_v24, -inf }
 0x350   :  { %912 = vmax.xlane.f32.xlu0 %v911_v25  ;;  %v806_v26 = vpop.f32.mrb[4].mxu0 }
 0x351   :  { %v3934_v27 = vpop.f32.mrb[5].mxu0  ;;  %v884_v29 = vpop.f32.mrb[10].mxu1  ;;  %v891_v35 = vadd.f32 %v806_v26, %v127_v2 }
 0x352   :  { %v895_v33 = vadd.f32 %v884_v29, %v127_v2  ;;  %v3939_v34 = vpop.f32.mrb[11].mxu1 }
 0x353   :  { %v905_v38 = vsel %vm268_vm2, %v891_v35, -inf }
 0x354   :  { %903 = vmax.xlane.f32.xlu0 %v902_v36  ;;  %v917_v37 = vsel %vm268_vm2, %v895_v33, -inf }
 0x355   :  { %918 = vmax.xlane.f32.xlu1 %v917_v37 }
 0x358   :  { %906 = vmax.xlane.f32.xlu0 %v905_v38 }
 0x366   :  { %1060 = vrot.lane.b32.xlu1 %v4841_v49, %s4642_s24 }
 0x36a   :  { %1136 = vrot.lane.b32.xlu1 %v4843_v51, %s4643_s25 }
 0x36e   :  { %1212 = vrot.lane.b32.xlu1 %v4841_v49, %s4643_s25  ;;  %984 = vrot.lane.b32.xlu0 %v4843_v51, %s4642_s24 }
 0x372   :  { %1364 = vrot.lane.b32.xlu1 %v4841_v49, %s4644_s26  ;;  %1288 = vrot.lane.b32.xlu0 %v4843_v51, %s4644_s26 }
 0x3ca   :  { %v898_v39 = vpop.xlane.xlu0 %897 }
 0x3cb   :  { %v920_v40 = vsub.f32 %v888_v4, %v898_v39 }
 0x3cd   :  { %v928_v41 = vmul.f32 1.442695, %v920_v40 }
 0x3ce   :  { %v910_v43 = vpop.xlane.xlu1 %909 }
 0x3cf   :  { %4388 = vpow2.f32 %v928_v41  ;;  %v924_v46 = vsub.f32 %v892_v8, %v910_v43 }
 0x3d1   :  { %v936_v47 = vmul.f32 1.442695, %v924_v46 }
 0x3d3   :  { %4390 = vpow2.f32 %v936_v47 }
 0x3d9   :  { %v4929_v48 = vpop.eup %4388  ;;  %v901_v50 = vpop.xlane.xlu0 %900 }
 0x3da   :  { %v921_v52 = vsub.f32 %v889_v14, %v901_v50  ;;  %v916_v53 = vpop.xlane.xlu1 %915  ;;  %v944_v54 = vsel %vm268_vm2, %v4929_v48, 0.0 }
 0x3db   :  { %945 = vadd.xlane.f32.xlu0 %v944_v54  ;;  %v926_v56 = vsub.f32 %v894_v17, %v916_v53 }
 0x3dc   :  { %v930_v55 = vmul.f32 1.442695, %v921_v52 }
 0x3dd   :  { %v4933_v57 = vpop.eup %4390  ;;  %v913_v58 = vpop.xlane.xlu0 %912  ;;  %v940_v61 = vmul.f32 1.442695, %v926_v56 }
 0x3de   :  { %4392 = vpow2.f32 %v930_v55  ;;  %v925_v59 = vsub.f32 %v893_v19, %v913_v58  ;;  %v956_v60 = vsel %vm268_vm2, %v4933_v57, 0.0 }
 0x3df   :  { %957 = vadd.xlane.f32.xlu1 %v956_v60 }
 0x3e0   :  { %v938_v62 = vmul.f32 1.442695, %v925_v59 }
 0x3e1   :  { %v904_v63 = vpop.xlane.xlu0 %903 }
 0x3e2   :  { %4394 = vpow2.f32 %v938_v62  ;;  %v922_v0 = vsub.f32 %v890_v24, %v904_v63  ;;  %v919_v1 = vpop.xlane.xlu1 %918  ;;  %v261_v63 = vld [vmem:[%s5328_s5] sm:$0xff] }
 0x3e3   :  { %v927_v2 = vsub.f32 %v895_v33, %v919_v1  ;;  %4396 = vpow2.f32 %v940_v61 }
 0x3e4   :  { %v932_v3 = vmul.f32 1.442695, %v922_v0  ;;  %v262_v0 = vld [vmem:[%s5328_s5 + $0x8] sm:$0xff] }
 0x3e5   :  { %v942_v4 = vmul.f32 1.442695, %v927_v2  ;;  %v907_v5 = vpop.xlane.xlu0 %906  ;;  %v4177_v1 = vpack.c.bf16 %v262_v0, %v261_v63  ;;  %v263_v2 = vld [vmem:[%s5328_s5 + $0x10] sm:$0xff]  ;;  %v4648_v0 = vmov 0.0|0.0  }
 0x3e6   :  { %4398 = vpow2.f32 %v932_v3  ;;  %v923_v6 = vsub.f32 %v891_v35, %v907_v5  ;;  %v1061_v7 = vpop.permute.xlu1 %1060  ;;  %v264_v3 = vld [vmem:[%s5328_s5 + $0x18] sm:$0xff]  ;;  %s4647_s5 = smov 24  }
 0x3e7   :  { %3946 = vmatpush3.msra.mxu1 %v1061_v7  ;;  %4400 = vpow2.f32 %v942_v4  ;;  %v4181_v4 = vpack.c.bf16 %v264_v3, %v263_v2 }
 0x3e8   :  { %v4393_v8 = vpop.eup %4392  ;;  %v934_v9 = vmul.f32 1.442695, %v923_v6  ;;  %3955 = vmatprep.subr.mxu1 %v4633_v45 }
 0x3e9   :  { %v985_v10 = vpop.permute.xlu0 %984  ;;  %v947_v11 = vsel %vm268_vm2, %v4393_v8, 0.0 }
 0x3ea   :  { %4402 = vpow2.f32 %v934_v9  ;;  %948 = vadd.xlane.f32.xlu0 %v947_v11  ;;  %3941 = vmatpush3.msra.mxu0 %v985_v10  ;;  %v1137_v22 = vpop.permute.xlu1 %1136 }
 0x3eb   :  { %3950 = vmatprep.subr.mxu0 %v4633_v45 }
 0x3ec   :  { %v4395_v12 = vpop.eup %4394 }
 0x3ed   :  { %v959_v13 = vsel %vm268_vm2, %v4395_v12, 0.0  ;;  %v4397_v14 = vpop.eup %4396  ;;  %v1289_v24 = vpop.permute.xlu0 %1288 }
 0x3ee   :  { %960 = vadd.xlane.f32.xlu1 %v959_v13  ;;  %v962_v16 = vsel %vm268_vm2, %v4397_v14, 0.0  ;;  %v1213_v23 = vpop.permute.xlu1 %1212 }
 0x3f0   :  { %v4399_v15 = vpop.eup %4398 }
 0x3f1   :  { %v950_v17 = vsel %vm268_vm2, %v4399_v15, 0.0  ;;  %v4943_v18 = vpop.eup %4400 }
 0x3f2   :  { %963 = vadd.xlane.f32.xlu1 %v962_v16  ;;  %951 = vadd.xlane.f32.xlu0 %v950_v17  ;;  %v965_v20 = vsel %vm268_vm2, %v4943_v18, 0.0  ;;  %v1365_v25 = vpop.permute.xlu1 %1364 }
 0x3f4   :  { %v4945_v19 = vpop.eup %4402 }
 0x3f5   :  { %v953_v21 = vsel %vm268_vm2, %v4945_v19, 0.0 }
 0x3f6   :  { %966 = vadd.xlane.f32.xlu1 %v965_v20  ;;  %954 = vadd.xlane.f32.xlu0 %v953_v21 }
 0x407   :  { %1516 = vrot.lane.b32.xlu1 %v4841_v49, %s4645_s27 }
 0x40c   :  { %1440 = vrot.lane.b32.xlu0 %v4843_v51, %s4645_s27 }
 0x468   :  { %v946_v26 = vpop.xlane.xlu0 %945 }
 0x469   :  { %4404 = vrcp.f32 %v946_v26 }
 0x46c   :  { %v958_v27 = vpop.xlane.xlu1 %957 }
 0x46d   :  { %4406 = vrcp.f32 %v958_v27 }
 0x473   :  { %v4405_v29 = vpop.eup %4404 }
 0x474   :  { %v976_v33 = vmul.f32 %v4405_v29, %v4929_v48 }
 0x476   :  { %3943 = vmatmul.mubr.msk.f32.vlgmr.msra.gmra.mrb[6].mxu0 %vm268_vm2, %v976_v33  ;;  %v1842_v33 = vld [vmem:[#allocation10] sm:$0xff] }
 0x477   :  { %v4407_v34 = vpop.eup %4406  ;;  %3951 = vmatpush3.msra.mxu0 %v1137_v22  ;;  %v949_v35 = vpop.xlane.xlu0 %948  ;;  %3952 = vmatprep.mubr.msk.f32.mxu0 %vm4634_vm1, %v4633_v45 }
 0x478   :  { %v980_v49 = vmul.f32 %v4407_v34, %v4933_v57  ;;  %4408 = vrcp.f32 %v949_v35  ;;  %3960 = vmatprep.subr.mxu0 %v4633_v45  ;;  %v1843_v34 = vld [vmem:[#allocation10 + $0x8] sm:$0xff] }
 0x479   :  { %v4193_v35 = vpack.c.bf16 %v1843_v34, %v1842_v33 }
 0x47a   :  { %3948 = vmatmul.mubr.msk.f32.vlgmr.msra.gmra.mrb[12].mxu1 %vm268_vm2, %v980_v49  ;;  %v1626_v49 = vsub.s32 7, %v4813_v28 }
 0x47b   :  { %3956 = vmatpush3.msra.mxu1 %v1213_v23  ;;  %v961_v51 = vpop.xlane.xlu1 %960  ;;  %3957 = vmatprep.mubr.msk.f32.mxu1 %vm4634_vm1, %v4633_v45 }
 0x47c   :  { %4410 = vrcp.f32 %v961_v51  ;;  %3965 = vmatprep.subr.mxu1 %v4633_v45  ;;  %v1627_v51 = vrot.slane %v4816_v31, %v1626_v49 }
 0x47f   :  { %v964_v36 = vpop.xlane.xlu1 %963  ;;  %v952_v37 = vpop.xlane.xlu0 %951 }
 0x480   :  { %4412 = vrcp.f32 %v964_v36 }
 0x481   :  { %4414 = vrcp.f32 %v952_v37 }
 0x482   :  { %v4409_v38 = vpop.eup %4408 }
 0x483   :  { %v977_v39 = vmul.f32 %v4409_v38, %v4393_v8  ;;  %v967_v40 = vpop.xlane.xlu1 %966  ;;  %v955_v41 = vpop.xlane.xlu0 %954 }
 0x484   :  { %4416 = vrcp.f32 %v967_v40 }
 0x485   :  { %4418 = vrcp.f32 %v955_v41  ;;  %3953 = vmatmul.mubr.msk.f32.vlgmr.msra.gmra.mrb[8].mxu0 %vm268_vm2, %v977_v39 }
 0x486   :  { %v4411_v43 = vpop.eup %4410  ;;  %3961 = vmatpush3.msra.mxu0 %v1289_v24  ;;  %3962 = vmatprep.mubr.msk.f32.mxu0 %vm4634_vm1, %v4633_v45 }
 0x487   :  { %v981_v46 = vmul.f32 %v4411_v43, %v4395_v12  ;;  %3970 = vmatprep.subr.mxu0 %v4633_v45  ;;  %v1517_v53 = vpop.permute.xlu1 %1516  ;;  %v1441_v55 = vpop.permute.xlu0 %1440 }
 0x489   :  { %3958 = vmatmul.mubr.msk.f32.vlgmr.msra.gmra.mrb[14].mxu1 %vm268_vm2, %v981_v46 }
 0x48a   :  { %v4413_v47 = vpop.eup %4412  ;;  %3966 = vmatpush3.msra.mxu1 %v1365_v25  ;;  %3967 = vmatprep.mubr.msk.f32.mxu1 %vm4634_vm1, %v4633_v45 }
 0x48b   :  { %v4415_v48 = vpop.eup %4414  ;;  %v982_v50 = vmul.f32 %v4413_v47, %v4397_v14  ;;  %3975 = vmatprep.subr.mxu1 %v4633_v45 }
 0x48c   :  { %v978_v52 = vmul.f32 %v4415_v48, %v4399_v15 }
 0x48d   :  { %3968 = vmatmul.mubr.msk.f32.vlgmr.msra.gmra.mrb[16].mxu1 %vm268_vm2, %v982_v50 }
 0x48e   :  { %v4417_v54 = vpop.eup %4416  ;;  %3963 = vmatmul.mubr.msk.f32.vlgmr.msra.gmra.mrb[10].mxu0 %vm268_vm2, %v978_v52  ;;  %3976 = vmatpush3.msra.mxu1 %v1517_v53  ;;  %v1845_v53 = vld [vmem:[#allocation10 + $0x18] sm:$0xff] }
 0x48f   :  { %v4419_v56 = vpop.eup %4418  ;;  %v983_v57 = vmul.f32 %v4417_v54, %v4943_v18  ;;  %3971 = vmatpush3.msra.mxu0 %v1441_v55  ;;  %3972 = vmatprep.mubr.msk.f32.mxu0 %vm4634_vm1, %v4633_v45  ;;  %v121_v54 = vld [vmem:[%s5324_s1] sm:$0xff]  ;;  %v122_v55 = vld [vmem:[%s5324_s1 + $0x8] sm:$0xff] }
 0x490   :  { %v979_v58 = vmul.f32 %v4419_v56, %v4945_v19  ;;  %3977 = vmatprep.mubr.msk.f32.mxu1 %vm4634_vm1, %v4633_v45  ;;  %4178 = vmatprep.subr.bf16.mxu0 %v4177_v1  ;;  %v123_v56 = vld [vmem:[%s5324_s1 + $0x10] sm:$0xff] }
 0x491   :  { %3978 = vmatmul.mubr.msk.f32.vlgmr.msra.gmra.mrb[18].mxu1 %vm268_vm2, %v983_v57  ;;  %v124_v57 = vld [vmem:[%s5324_s1 + $0x18] sm:$0xff] }
 0x492   :  { %3973 = vmatmul.mubr.msk.f32.vlgmr.msra.gmra.mrb[12].mxu0 %vm268_vm2, %v979_v58  ;;  %v1753_v58 = vld [vmem:[#allocation8] sm:$0xff] }
 0x493   :  { %4180 = vmatpush3.bf16.msra.mxu0 %v4177_v1 }
 0x494   :  { %4182 = vmatprep.subr.bf16.mxu0 %v4181_v4 }
 0x497   :  { %4184 = vmatpush3.bf16.msra.mxu0 %v4181_v4 }
 0x498   :  { %4194 = vmatprep.subr.bf16.mxu0 %v4193_v35 }
 0x549   :  { %v1056_v59 = vpop.f32.mrb[6].mxu0 }
 0x54a   :  { %v3944_v60 = vpop.f32.mrb[7].mxu0 }
 0x54d   :  { %v1132_v61 = vpop.f32.mrb[12].mxu1 }
 0x54e   :  { %v3949_v62 = vpop.f32.mrb[13].mxu1 }
 0x54f   :  { %v1756_v62 = vld [vmem:[#allocation8 + $0x18] sm:$0xff] }
 0x558   :  { %v1208_v5 = vpop.f32.mrb[8].mxu0 }
 0x559   :  { %1594 = vrot.lane.b32.xlu0 %v1208_v5, %s4629_s22  ;;  %v3954_v6 = vpop.f32.mrb[9].mxu0 }
 0x55c   :  { %v1284_v7 = vpop.f32.mrb[14].mxu1 }
 0x55d   :  { %1596 = vrot.lane.b32.xlu1 %v1284_v7, %s4629_s22  ;;  %v3959_v8 = vpop.f32.mrb[15].mxu1 }
 0x560   :  { %v1436_v9 = vpop.f32.mrb[16].mxu1 }
 0x561   :  { %v1360_v10 = vpop.f32.mrb[10].mxu0  ;;  %1604 = vrot.lane.b32.xlu1 %v1436_v9, %s4646_s14  ;;  %v3969_v11 = vpop.f32.mrb[17].mxu1 }
 0x562   :  { %1602 = vrot.lane.b32.xlu0 %v1360_v10, %s4646_s14  ;;  %v3964_v12 = vpop.f32.mrb[11].mxu0 }
 0x564   :  { %v1588_v13 = vpop.f32.mrb[18].mxu1 }
 0x565   :  { %v1512_v14 = vpop.f32.mrb[12].mxu0  ;;  %1612 = vrot.lane.b32.xlu1 %v1588_v13, %s4647_s5  ;;  %v3979_v15 = vpop.f32.mrb[19].mxu1 }
 0x566   :  { %1610 = vrot.lane.b32.xlu0 %v1512_v14, %s4647_s5  ;;  %v3974_v16 = vpop.f32.mrb[13].mxu0  ;;  %v1743_v15 = vsub.s32 2, %v4813_v28 }
 0x567   :  { %v1749_v16 = vsub.s32 3, %v4813_v28 }
 0x5cb   :  { %v1595_v18 = vpop.permute.xlu0 %1594 }
 0x5cc   :  { %v1616_v22 = vsel %vm268_vm2, %v1056_v59, %v1595_v18  ;;  %v1754_v59 = vld [vmem:[#allocation8 + $0x8] sm:$0xff]  ;;  %v1744_v18 = vrot.slane %v4816_v31, %v1743_v15 }
 0x5cd   :  { %v4185_v60 = vpack.c.bf16 %v1754_v59, %v1753_v58 }
 0x5cf   :  { %v1597_v17 = vpop.permute.xlu1 %1596  ;;  %4186 = vmatprep.subr.bf16.mxu1 %v4185_v60 }
 0x5d0   :  { %v1617_v21 = vsel %vm268_vm2, %v1132_v61, %v1597_v17  ;;  %4188 = vmatpush3.bf16.msra.mxu1 %v4185_v60  ;;  %v1755_v61 = vld [vmem:[#allocation8 + $0x10] sm:$0xff] }
 0x5d1   :  { %v4189_v63 = vpack.c.bf16 %v1756_v62, %v1755_v61 }
 0x5d3   :  { %v1605_v19 = vpop.permute.xlu1 %1604  ;;  %4190 = vmatprep.subr.bf16.mxu1 %v4189_v63 }
 0x5d4   :  { %v1603_v20 = vpop.permute.xlu0 %1602  ;;  %v1620_v23 = vsel %vm1618_vm3, %v1617_v21, %v1605_v19  ;;  %4192 = vmatpush3.bf16.msra.mxu1 %v4189_v63  ;;  %v1750_v21 = vrot.slane %v4816_v31, %v1749_v16  ;;  %v5059_v31 = vld [vmem:[#allocation7 + $0x8] sm:$0x1f] }
 0x5d5   :  { %v1619_v25 = vsel %vm1618_vm3, %v1616_v22, %v1603_v20  ;;  %4201 = vmatprep.subr.bf16.mxu1 %v4648_v0  ;;  %v1849_v33 = vrot.slane %v5059_v31, %v168_v32 }
 0x5d7   :  { %v1613_v24 = vpop.permute.xlu1 %1612 }
 0x5d8   :  { %v1623_v26 = vsel %vm1621_vm4, %v1620_v23, %v1613_v24  ;;  %v1611_v27 = vpop.permute.xlu0 %1610 }
 0x5d9   :  { %v1622_v29 = vsel %vm1621_vm4, %v1619_v25, %v1611_v27 }
 0x5da   :  { %3988 = vmatprep.mubr.msk.f32.mxu0 %vm128_vm0, %v1622_v29 }
 0x5db   :  { %3989 = vmatmul.mubr.msk.f32.vlgmr.msra.gmra.mrb[14].mxu0 %vm128_vm0, %v1623_v26 }
 0x5dc   :  { %4196 = vmatpush3.bf16.msra.mxu0 %v4193_v35  ;;  %4010 = vmatprep.mubr.msk.f32.mxu0 %vm128_vm0, %v121_v54 }
 0x6ae   :  { %v3990_v36 = vpop.f32.mrb[14].mxu0 }
 0x6af   :  { %v1706_v37 = vadd.f32 %v3990_v36, %v1627_v51  ;;  %v1700_v38 = vpop.f32.mrb[15].mxu0 }
 0x6b0   :  { %v1701_v39 = vadd.f32 %v1700_v38, %v1627_v51 }
 0x6b1   :  { %v5010_v40 = vadd.f32 %v1706_v37, %v4829_v44  ;;  %v1844_v44 = vld [vmem:[#allocation10 + $0x10] sm:$0xff] }
 0x6b2   :  { %v1709_v41 = vadd.f32 %v1701_v39, %v4825_v42  ;;  %v4197_v42 = vpack.c.bf16 %v1845_v53, %v1844_v44 }
 0x6b3   :  { %v1714_v43 = vsel %vm128_vm0, %v5010_v40, 0.0  ;;  %v1720_v50 = vmul.f32 %v5010_v40, %v5010_v40 }
 0x6b4   :  { %1715 = vadd.xlane.f32.xlu1 %v1714_v43  ;;  %v1711_v46 = vsel %vm128_vm0, %v1709_v41, 0.0  ;;  %v1719_v47 = vmul.f32 %v1709_v41, %v1709_v41  ;;  %4198 = vmatprep.subr.bf16.mxu0 %v4197_v42 }
 0x6b5   :  { %1712 = vadd.xlane.f32.xlu0 %v1711_v46  ;;  %v1724_v52 = vsel %vm128_vm0, %v1720_v50, 0.0  ;;  %4200 = vmatpush3.bf16.msra.mxu0 %v4197_v42 }
 0x6b6   :  { %v1721_v48 = vsel %vm128_vm0, %v1719_v47, 0.0  ;;  %4205 = vmatprep.subr.bf16.mxu0 %v4648_v0 }
 0x6b8   :  { %4011 = vmatmul.mubr.msk.f32.vlgmr.msra.gmra.mrb[16].mxu0 %vm128_vm0, %v122_v55 }
 0x6b9   :  { %1722 = vadd.xlane.f32.xlu0 %v1721_v48  ;;  %4013 = vmatprep.mubr.msk.f32.mxu0 %vm128_vm0, %v123_v56  ;;  %v1760_v48 = vrot.slane %v5059_v31, %v162_v30 }
 0x6bc   :  { %4014 = vmatmul.mubr.msk.f32.gmra.mrb[18].mxu0 %vm128_vm0, %v124_v57 }
 0x6bd   :  { %1725 = vadd.xlane.f32.xlu0 %v1724_v52  ;;  %4027 = vmatprep.mubr.msk.f32.mxu0 %vm4634_vm1, %v4633_v45 }
 0x741   :  { %v1716_v3 = vpop.xlane.xlu1 %1715 }
 0x742   :  { %v1713_v1 = vpop.xlane.xlu0 %1712  ;;  %v1718_v5 = vmul.f32 0.03125, %v1716_v3 }
 0x743   :  { %v1717_v2 = vmul.f32 0.03125, %v1713_v1 }
 0x744   :  { %v1730_v10 = vmul.f32 %v1718_v5, %v1718_v5  ;;  %v1734_v22 = vsub.f32 %v5010_v40, %v1718_v5 }
 0x745   :  { %v1729_v6 = vmul.f32 %v1717_v2, %v1717_v2  ;;  %v1733_v17 = vsub.f32 %v1709_v41, %v1717_v2 }
 0x746   :  { %v1723_v4 = vpop.xlane.xlu0 %1722 }
 0x747   :  { %v1727_v7 = vmul.f32 0.03125, %v1723_v4 }
 0x749   :  { %v1731_v8 = vsub.f32 %v1727_v7, %v1729_v6 }
 0x74a   :  { %v1726_v9 = vpop.xlane.xlu0 %1725 }
 0x74b   :  { %v1735_v11 = vadd.f32 1e-05, %v1731_v8  ;;  %v1728_v12 = vmul.f32 0.03125, %v1726_v9 }
 0x74d   :  { %4420 = vrsqrt.f32 %v1735_v11  ;;  %v1732_v13 = vsub.f32 %v1728_v12, %v1730_v10 }
 0x74f   :  { %v1736_v14 = vadd.f32 1e-05, %v1732_v13 }
 0x751   :  { %4422 = vrsqrt.f32 %v1736_v14 }
 0x757   :  { %v4421_v19 = vpop.eup %4420 }
 0x758   :  { %v1739_v20 = vmul.f32 %v4421_v19, %v1733_v17 }
 0x75a   :  { %v1745_v23 = vmul.f32 %v1744_v18, %v1739_v20 }
 0x75b   :  { %v4423_v24 = vpop.eup %4422 }
 0x75c   :  { %v1740_v25 = vmul.f32 %v4423_v24, %v1734_v22  ;;  %v5049_v26 = vadd.f32 %v1750_v21, %v1745_v23 }
 0x75e   :  { %v1746_v27 = vmul.f32 %v1744_v18, %v1740_v25  ;;  %3999 = vmatprep.mubr.msk.f32.mxu1 %vm128_vm0, %v5049_v26 }
 0x760   :  { %v5053_v29 = vadd.f32 %v1750_v21, %v1746_v27 }
 0x762   :  { %4000 = vmatmul.mubr.msk.f32.vlgmr.msra.gmra.mrb[20].mxu1 %vm128_vm0, %v5053_v29 }
 0x763   :  { %4020 = vmatprep.mubr.msk.f32.mxu1 %vm4634_vm1, %v4633_v45 }
 0x78b   :  { %v4012_v34 = vpop.f32.mrb[16].mxu0 }
 0x78c   :  { %v1934_v35 = vadd.f32 %v4012_v34, %v1849_v33  ;;  %v1928_v49 = vpop.f32.mrb[17].mxu0 }
 0x78d   :  { %v1929_v51 = vadd.f32 %v1928_v49, %v1849_v33 }
 0x78f   :  { %v4015_v37 = vpop.f32.mrb[18].mxu0  ;;  %v5070_v38 = vpack.i.bf16 %v1934_v35, %v1929_v51  ;;  %v4202_v39 = vpack.c.bf16 %v1934_v35, %v1929_v51 }
 0x790   :  { %v1944_v40 = vadd.f32 %v4015_v37, %v1849_v33  ;;  %v1938_v41 = vpop.f32.mrb[19].mxu0 }
 0x791   :  { %v1939_v43 = vadd.f32 %v1938_v41, %v1849_v33  ;;  %4315 = vrot.lane.b32.xlu0 %v5070_v38, %s4637_s3  ;;  %4204 = vmatpush3.bf16.xpose.msk.msra.mxu1 %vm5066_vm5, %v4202_v39 }
 0x792   :  { %4209 = vmatprep.subr.bf16.mxu1 %v4648_v0 }
 0x793   :  { %v5077_v32 = vpack.i.bf16 %v1944_v40, %v1939_v43  ;;  %v4206_v46 = vpack.c.bf16 %v1944_v40, %v1939_v43 }
 0x795   :  { %4320 = vrot.lane.b32.xlu1 %v5077_v32, %s4637_s3  ;;  %4208 = vmatpush3.bf16.xpose.msk.msra.mxu0 %vm5066_vm5, %v4206_v46 }
 0x796   :  { %4213 = vmatprep.subr.bf16.mxu0 %v4648_v0 }
 0x799   :  { %4325 = vrot.lane.b32.xlu1 %v5070_v38, %s4639_s21 }
 0x79d   :  { %4330 = vrot.lane.b32.xlu1 %v5077_v32, %s4639_s21 }
 0x803   :  { %v4316_v47 = vpop.permute.xlu0 %4315 }
 0x804   :  { %v4318_v53 = vunpack.i.h.bf16 %v4316_v47  ;;  %v4317_v42 = vunpack.i.l.bf16 %v4316_v47 }
 0x806   :  { %v4210_v58 = vpack.c.bf16 %v4318_v53, %v4317_v42 }
 0x807   :  { %v4321_v50 = vpop.permute.xlu1 %4320 }
 0x808   :  { %v4323_v52 = vunpack.i.h.bf16 %v4321_v50  ;;  %v4322_v44 = vunpack.i.l.bf16 %v4321_v50 }
 0x80a   :  { %v4214_v57 = vpack.c.bf16 %v4323_v52, %v4322_v44 }
 0x80b   :  { %v4326_v30 = vpop.permute.xlu1 %4325 }
 0x80c   :  { %v4328_v63 = vunpack.i.h.bf16 %v4326_v30  ;;  %v4327_v1 = vunpack.i.l.bf16 %v4326_v30 }
 0x80e   :  { %v4218_v4 = vpack.c.bf16 %v4328_v63, %v4327_v1 }
 0x80f   :  { %v4331_v60 = vpop.permute.xlu1 %4330 }
 0x810   :  { %v4333_v61 = vunpack.i.h.bf16 %v4331_v60  ;;  %v4332_v62 = vunpack.i.l.bf16 %v4331_v60 }
 0x812   :  { %v4222_v2 = vpack.c.bf16 %v4333_v61, %v4332_v62 }
 0x835   :  { %v4001_v54 = vpop.f32.mrb[20].mxu1 }
 0x836   :  { %v1839_v55 = vadd.f32 %v4001_v54, %v1760_v48  ;;  %v1833_v56 = vpop.f32.mrb[21].mxu1 }
 0x837   :  { %v1834_v59 = vadd.f32 %v1833_v56, %v1760_v48 }
 0x838   :  { %2191 = vrot.lane.b32.xlu1 %v1839_v55, %s4637_s3  ;;  %4028 = vmatmul.mubr.msk.f32.vlgmr.msra.gmra.mrb[20].mxu0 %vm268_vm2, %v1839_v55 }
 0x839   :  { %2109 = vrot.lane.b32.xlu0 %v1834_v59, %s4637_s3  ;;  %4021 = vmatmul.mubr.msk.f32.vlgmr.msra.gmra.mrb[22].mxu1 %vm268_vm2, %v1834_v59 }
 0x83a   :  { %4212 = vmatpush3.bf16.xpose.msk.msra.mxu1 %vm5066_vm5, %v4210_v58  ;;  %4216 = vmatpush3.bf16.xpose.msk.msra.mxu0 %vm5066_vm5, %v4214_v57 }
 0x83b   :  { %4041 = vmatprep.mubr.msk.f32.mxu0 %vm4634_vm1, %v4633_v45  ;;  %4221 = vmatprep.subr.bf16.mxu0 %v4648_v0 }
 0x83c   :  { %4340 = vrot.lane.b32.xlu1 %v5077_v32, %s4641_s23  ;;  %4034 = vmatprep.mubr.msk.f32.mxu1 %vm4634_vm1, %v4633_v45 }
 0x83d   :  { %4335 = vrot.lane.b32.xlu0 %v5070_v38, %s4641_s23  ;;  %4217 = vmatprep.subr.bf16.mxu1 %v4648_v0 }
 0x840   :  { %2355 = vrot.lane.b32.xlu1 %v1839_v55, %s4639_s21 }
 0x841   :  { %2273 = vrot.lane.b32.xlu0 %v1834_v59, %s4639_s21 }
 0x844   :  { %2519 = vrot.lane.b32.xlu1 %v1839_v55, %s4641_s23 }
 0x845   :  { %2437 = vrot.lane.b32.xlu0 %v1834_v59, %s4641_s23 }
 0x8aa   :  { %v2192_v3 = vpop.permute.xlu1 %2191 }
 0x8ab   :  { %4042 = vmatmul.mubr.msk.f32.vlgmr.msra.gmra.mrb[22].mxu0 %vm268_vm2, %v2192_v3  ;;  %v2110_v5 = vpop.permute.xlu0 %2109 }
 0x8ac   :  { %4224 = vmatpush3.bf16.xpose.msk.msra.mxu0 %vm5066_vm5, %v4222_v2  ;;  %4035 = vmatmul.mubr.msk.f32.vlgmr.msra.gmra.mrb[24].mxu1 %vm268_vm2, %v2110_v5 }
 0x8ad   :  { %4220 = vmatpush3.bf16.xpose.msk.msra.mxu1 %vm5066_vm5, %v4218_v4  ;;  %4055 = vmatprep.mubr.msk.f32.mxu0 %vm4634_vm1, %v4633_v45 }
 0x8ae   :  { %v4341_v6 = vpop.permute.xlu1 %4340  ;;  %4229 = vmatprep.subr.bf16.mxu0 %v4648_v0  ;;  %4048 = vmatprep.mubr.msk.f32.mxu1 %vm4634_vm1, %v4633_v45 }
 0x8af   :  { %v4343_v7 = vunpack.i.h.bf16 %v4341_v6  ;;  %v4342_v8 = vunpack.i.l.bf16 %v4341_v6  ;;  %v4336_v9 = vpop.permute.xlu0 %4335  ;;  %4225 = vmatprep.subr.bf16.mxu1 %v4648_v0 }
 0x8b0   :  { %v4338_v10 = vunpack.i.h.bf16 %v4336_v9  ;;  %v4337_v11 = vunpack.i.l.bf16 %v4336_v9 }
 0x8b1   :  { %v4230_v12 = vpack.c.bf16 %v4343_v7, %v4342_v8 }
 0x8b2   :  { %v4226_v13 = vpack.c.bf16 %v4338_v10, %v4337_v11  ;;  %v2356_v14 = vpop.permute.xlu1 %2355 }
 0x8b3   :  { %4056 = vmatmul.mubr.msk.f32.vlgmr.msra.gmra.mrb[24].mxu0 %vm268_vm2, %v2356_v14  ;;  %v2274_v17 = vpop.permute.xlu0 %2273 }
 0x8b4   :  { %4232 = vmatpush3.bf16.xpose.msk.msra.mxu0 %vm5066_vm5, %v4230_v12  ;;  %4049 = vmatmul.mubr.msk.f32.vlgmr.msra.gmra.mrb[26].mxu1 %vm268_vm2, %v2274_v17 }
 0x8b5   :  { %4228 = vmatpush3.bf16.xpose.msk.msra.mxu1 %vm5066_vm5, %v4226_v13  ;;  %4069 = vmatprep.mubr.msk.f32.mxu0 %vm4634_vm1, %v4633_v45 }
 0x8b6   :  { %4062 = vmatprep.mubr.msk.f32.mxu1 %vm4634_vm1, %v4633_v45  ;;  %4233 = vmatprep.subr.bf16.mxu1 %v4648_v0  ;;  %v2520_v18 = vpop.permute.xlu1 %2519 }
 0x8b7   :  { %4239 = vmatprep.subr.bf16.mxu0 %v4648_v0  ;;  %v2438_v19 = vpop.permute.xlu0 %2437 }
 0x8bb   :  { %4070 = vmatmul.mubr.msk.f32.vlgmr.msra.gmra.mrb[26].mxu0 %vm268_vm2, %v2520_v18 }
 0x8bc   :  { %4063 = vmatmul.mubr.msk.f32.vlgmr.msra.gmra.mrb[28].mxu1 %vm268_vm2, %v2438_v19  ;;  %4090 = vmatprep.mubr.msk.f32.mxu0 %vm4634_vm1, %v4633_v45 }
 0x8bd   :  { %4076 = vmatprep.mubr.msk.f32.mxu1 %vm4634_vm1, %v4633_v45 }
 0x90b   :  { %v2105_v20 = vpop.f32.mrb[20].mxu0 }
 0x90c   :  { %v2026_v21 = vpop.f32.mrb[22].mxu1  ;;  %v4029_v22 = vpop.f32.mrb[21].mxu0  ;;  %v2613_v23 = vsel %vm1618_vm3, %v2105_v20, -inf }
 0x90d   :  { %2614 = vmax.xlane.f32.xlu1 %v2613_v23  ;;  %v4022_v24 = vpop.f32.mrb[23].mxu1  ;;  %v2601_v25 = vsel %vm1618_vm3, %v2026_v21, -inf }
 0x90e   :  { %2602 = vmax.xlane.f32.xlu0 %v2601_v25 }
 0x97e   :  { %v2269_v27 = vpop.f32.mrb[22].mxu0 }
 0x97f   :  { %v2187_v33 = vpop.f32.mrb[24].mxu1  ;;  %v4043_v34 = vpop.f32.mrb[23].mxu0  ;;  %v2616_v35 = vsel %vm1618_vm3, %v2269_v27, -inf }
 0x980   :  { %2617 = vmax.xlane.f32.xlu0 %v2616_v35  ;;  %v4036_v49 = vpop.f32.mrb[25].mxu1  ;;  %v2604_v51 = vsel %vm1618_vm3, %v2187_v33, -inf }
 0x984   :  { %2605 = vmax.xlane.f32.xlu0 %v2604_v51 }
 0x986   :  { %v2433_v36 = vpop.f32.mrb[24].mxu0 }
 0x987   :  { %v2351_v37 = vpop.f32.mrb[26].mxu1  ;;  %v4057_v39 = vpop.f32.mrb[25].mxu0  ;;  %v2619_v40 = vsel %vm1618_vm3, %v2433_v36, -inf }
 0x988   :  { %2620 = vmax.xlane.f32.xlu1 %v2619_v40  ;;  %v4050_v41 = vpop.f32.mrb[27].mxu1  ;;  %v2607_v43 = vsel %vm1618_vm3, %v2351_v37, -inf }
 0x989   :  { %2608 = vmax.xlane.f32.xlu0 %v2607_v43 }
 0x98e   :  { %v2597_v46 = vpop.f32.mrb[26].mxu0 }
 0x98f   :  { %v2515_v47 = vpop.f32.mrb[28].mxu1  ;;  %v4071_v48 = vpop.f32.mrb[27].mxu0  ;;  %v2622_v50 = vsel %vm1618_vm3, %v2597_v46, -inf }
 0x990   :  { %2623 = vmax.xlane.f32.xlu1 %v2622_v50  ;;  %v4064_v52 = vpop.f32.mrb[29].mxu1  ;;  %v2610_v44 = vsel %vm1618_vm3, %v2515_v47, -inf }
 0x991   :  { %2611 = vmax.xlane.f32.xlu0 %v2610_v44 }
 0x99a   :  { %v2615_v54 = vpop.xlane.xlu1 %2614 }
 0x99b   :  { %v2603_v53 = vpop.xlane.xlu0 %2602  ;;  %v2629_v56 = vsub.f32 %v2105_v20, %v2615_v54 }
 0x99c   :  { %v2625_v42 = vsub.f32 %v2026_v21, %v2603_v53 }
 0x99d   :  { %v2641_v57 = vmul.f32 1.442695, %v2629_v56 }
 0x99e   :  { %v2633_v55 = vmul.f32 1.442695, %v2625_v42 }
 0x9a0   :  { %4424 = vpow2.f32 %v2633_v55 }
 0x9a1   :  { %4350 = vrot.lane.b32.xlu1 %v5077_v32, %s4635_s4  ;;  %4426 = vpow2.f32 %v2641_v57 }
 0x9a5   :  { %4355 = vrot.lane.b32.xlu1 %v5070_v38, %s4636_s19 }
 0x9a7   :  { %4345 = vrot.lane.b32.xlu0 %v5070_v38, %s4635_s4 }
 0x9a9   :  { %4360 = vrot.lane.b32.xlu1 %v5077_v32, %s4636_s19 }
 0x9aa   :  { %v5163_v58 = vpop.eup %4424 }
 0x9ab   :  { %4365 = vrot.lane.b32.xlu0 %v5070_v38, %s4638_s17  ;;  %v2649_v59 = vsel %vm1618_vm3, %v5163_v58, 0.0  ;;  %v5167_v30 = vpop.eup %4426 }
 0x9ac   :  { %v2661_v60 = vsel %vm1618_vm3, %v5167_v30, 0.0 }
 0x9ad   :  { %4370 = vrot.lane.b32.xlu1 %v5077_v32, %s4638_s17 }
 0x9ca   :  { %2650 = vadd.xlane.f32.xlu0 %v2649_v59 }
 0x9d1   :  { %2662 = vadd.xlane.f32.xlu1 %v2661_v60 }
 0xa0d   :  { %v2618_v61 = vpop.xlane.xlu0 %2617 }
 0xa0e   :  { %v2630_v62 = vsub.f32 %v2269_v27, %v2618_v61 }
 0xa10   :  { %v2643_v63 = vmul.f32 1.442695, %v2630_v62 }
 0xa11   :  { %v2606_v1 = vpop.xlane.xlu0 %2605 }
 0xa12   :  { %4428 = vpow2.f32 %v2643_v63  ;;  %v2626_v2 = vsub.f32 %v2187_v33, %v2606_v1 }
 0xa14   :  { %v2635_v3 = vmul.f32 1.442695, %v2626_v2 }
 0xa15   :  { %v2621_v4 = vpop.xlane.xlu1 %2620 }
 0xa16   :  { %4430 = vpow2.f32 %v2635_v3  ;;  %v2631_v5 = vsub.f32 %v2433_v36, %v2621_v4  ;;  %v2609_v6 = vpop.xlane.xlu0 %2608 }
 0xa17   :  { %v2627_v7 = vsub.f32 %v2351_v37, %v2609_v6 }
 0xa18   :  { %v2645_v8 = vmul.f32 1.442695, %v2631_v5 }
 0xa19   :  { %v2637_v9 = vmul.f32 1.442695, %v2627_v7 }
 0xa1a   :  { %4432 = vpow2.f32 %v2645_v8 }
 0xa1b   :  { %4434 = vpow2.f32 %v2637_v9 }
 0xa1c   :  { %v5171_v10 = vpop.eup %4428 }
 0xa1d   :  { %v2624_v11 = vpop.xlane.xlu1 %2623  ;;  %v2664_v12 = vsel %vm1618_vm3, %v5171_v10, 0.0 }
 0xa1e   :  { %v2632_v13 = vsub.f32 %v2597_v46, %v2624_v11  ;;  %v2612_v14 = vpop.xlane.xlu0 %2611  ;;  %2665 = vadd.xlane.f32.xlu1 %v2664_v12 }
 0xa1f   :  { %v2628_v17 = vsub.f32 %v2515_v47, %v2612_v14 }
 0xa20   :  { %v5175_v18 = vpop.eup %4430  ;;  %v2647_v19 = vmul.f32 1.442695, %v2632_v13 }
 0xa21   :  { %v2639_v20 = vmul.f32 1.442695, %v2628_v17  ;;  %v4351_v21 = vpop.permute.xlu1 %4350  ;;  %v2652_v22 = vsel %vm1618_vm3, %v5175_v18, 0.0 }
 0xa22   :  { %4436 = vpow2.f32 %v2647_v19  ;;  %v4346_v23 = vpop.permute.xlu0 %4345  ;;  %2653 = vadd.xlane.f32.xlu0 %v2652_v22  ;;  %v4353_v53 = vunpack.i.h.bf16 %v4351_v21  ;;  %v4352_v42 = vunpack.i.l.bf16 %v4351_v21 }
 0xa23   :  { %4438 = vpow2.f32 %v2639_v20  ;;  %v4348_v24 = vunpack.i.h.bf16 %v4346_v23  ;;  %v4347_v25 = vunpack.i.l.bf16 %v4346_v23 }
 0xa24   :  { %v5179_v27 = vpop.eup %4432  ;;  %v4237_v56 = vpack.c.bf16 %v4353_v53, %v4352_v42 }
 0xa25   :  { %v5181_v33 = vpop.eup %4434  ;;  %v4234_v34 = vpack.c.bf16 %v4348_v24, %v4347_v25  ;;  %v4356_v35 = vpop.permute.xlu1 %4355  ;;  %v2667_v49 = vsel %vm1618_vm3, %v5179_v27, 0.0 }
 0xa26   :  { %v4358_v51 = vunpack.i.h.bf16 %v4356_v35  ;;  %v4357_v36 = vunpack.i.l.bf16 %v4356_v35  ;;  %2668 = vadd.xlane.f32.xlu1 %v2667_v49  ;;  %v2655_v37 = vsel %vm1618_vm3, %v5181_v33, 0.0  ;;  %v4366_v47 = vpop.permute.xlu0 %4365 }
 0xa27   :  { %4235 = vmatpush3.bf16.msra.mxu1 %v4234_v34  ;;  %2656 = vadd.xlane.f32.xlu0 %v2655_v37  ;;  %v4368_v4 = vunpack.i.h.bf16 %v4366_v47  ;;  %v4367_v5 = vunpack.i.l.bf16 %v4366_v47  ;;  %v1947_v37 = vld [vmem:[#allocation11] sm:$0xff] }
 0xa28   :  { %v4240_v39 = vpack.c.bf16 %v4358_v51, %v4357_v36  ;;  %4236 = vmatprep.subr.bf16.mxu1 %v4648_v0 }
 0xa29   :  { %v4361_v48 = vpop.permute.xlu1 %4360  ;;  %v4246_v11 = vpack.c.bf16 %v4368_v4, %v4367_v5  ;;  %v3354_v4 = vrot.slane %v5059_v31, %v1743_v15 }
 0xa2a   :  { %4241 = vmatpush3.bf16.msra.mxu0 %v4240_v39  ;;  %v1948_v39 = vld [vmem:[#allocation11 + $0x8] sm:$0xff] }
 0xa2b   :  { %4245 = vmatprep.subr.bf16.mxu0 %v4648_v0 }
 0xa2c   :  { %v5189_v40 = vpop.eup %4436 }
 0xa2d   :  { %v5191_v41 = vpop.eup %4438  ;;  %v2670_v43 = vsel %vm1618_vm3, %v5189_v40, 0.0  ;;  %v4371_v52 = vpop.permute.xlu1 %4370 }
 0xa2e   :  { %2671 = vadd.xlane.f32.xlu1 %v2670_v43  ;;  %v2658_v46 = vsel %vm1618_vm3, %v5191_v41, 0.0  ;;  %v4373_v63 = vunpack.i.h.bf16 %v4371_v52  ;;  %v4372_v1 = vunpack.i.l.bf16 %v4371_v52  ;;  %v1949_v43 = vld [vmem:[#allocation11 + $0x10] sm:$0xff] }
 0xa2f   :  { %2659 = vadd.xlane.f32.xlu0 %v2658_v46  ;;  %v1950_v46 = vld [vmem:[#allocation11 + $0x18] sm:$0xff] }
 0xa30   :  { %v4249_v6 = vpack.c.bf16 %v4373_v63, %v4372_v1  ;;  %v4261_v47 = vpack.c.bf16 %v1950_v46, %v1949_v43 }
 0xa3f   :  { %4380 = vrot.lane.b32.xlu1 %v5077_v32, %s4640_s2  ;;  %v4362_v32 = vunpack.i.l.bf16 %v4361_v48 }
 0xa45   :  { %4375 = vrot.lane.b32.xlu0 %v5070_v38, %s4640_s2  ;;  %v4363_v38 = vunpack.i.h.bf16 %v4361_v48 }
 0xa47   :  { %v4243_v60 = vpack.c.bf16 %v4363_v38, %v4362_v32 }
 0xa57   :  { %v2651_v50 = vpop.xlane.xlu0 %2650 }
 0xa58   :  { %4440 = vrcp.f32 %v2651_v50 }
 0xa5e   :  { %v2663_v44 = vpop.xlane.xlu1 %2662 }
 0xa5f   :  { %4442 = vrcp.f32 %v2663_v44 }
 0xa62   :  { %v4441_v54 = vpop.eup %4440 }
 0xa63   :  { %v2681_v55 = vmul.f32 %v4441_v54, %v5163_v58 }
 0xa65   :  { %4077 = vmatmul.mubr.msk.f32.vlgmr.msra.gmra.mrb[30].mxu1 %vm1618_vm3, %v2681_v55 }
 0xa66   :  { %4238 = vmatpush3.bf16.msra.mxu1 %v4237_v56  ;;  %4083 = vmatprep.mubr.msk.f32.mxu1 %vm4634_vm1, %v4633_v45 }
 0xa67   :  { %4242 = vmatprep.subr.bf16.mxu1 %v4648_v0 }
 0xa69   :  { %v4443_v57 = vpop.eup %4442 }
 0xa6a   :  { %v2685_v59 = vmul.f32 %v4443_v57, %v5167_v30 }
 0xa6c   :  { %4084 = vmatmul.mubr.msk.f32.vlgmr.msra.gmra.mrb[32].mxu1 %vm1618_vm3, %v2685_v59 }
 0xa6d   :  { %4244 = vmatpush3.bf16.msra.mxu1 %v4243_v60  ;;  %4097 = vmatprep.mubr.msk.f32.mxu1 %vm4634_vm1, %v4633_v45 }
 0xa6e   :  { %4248 = vmatprep.subr.bf16.mxu1 %v4648_v0 }
 0xaab   :  { %v2666_v58 = vpop.xlane.xlu1 %2665 }
 0xaac   :  { %4444 = vrcp.f32 %v2666_v58 }
 0xaaf   :  { %v2654_v61 = vpop.xlane.xlu0 %2653 }
 0xab0   :  { %4446 = vrcp.f32 %v2654_v61 }
 0xab3   :  { %v2669_v62 = vpop.xlane.xlu1 %2668 }
 0xab4   :  { %4448 = vrcp.f32 %v2669_v62  ;;  %v2657_v2 = vpop.xlane.xlu0 %2656 }
 0xab5   :  { %4450 = vrcp.f32 %v2657_v2 }
 0xab6   :  { %v4445_v30 = vpop.eup %4444 }
 0xab7   :  { %v2686_v3 = vmul.f32 %v4445_v30, %v5171_v10 }
 0xab9   :  { %4098 = vmatmul.mubr.msk.f32.vlgmr.msra.gmra.mrb[34].mxu1 %vm1618_vm3, %v2686_v3 }
 0xaba   :  { %v4447_v7 = vpop.eup %4446  ;;  %4250 = vmatpush3.bf16.msra.mxu1 %v4249_v6  ;;  %4111 = vmatprep.mubr.msk.f32.mxu1 %vm4634_vm1, %v4633_v45 }
 0xabb   :  { %v2682_v8 = vmul.f32 %v4447_v7, %v5175_v18  ;;  %v2672_v9 = vpop.xlane.xlu1 %2671  ;;  %4254 = vmatprep.subr.bf16.mxu1 %v4648_v0 }
 0xabc   :  { %4452 = vrcp.f32 %v2672_v9  ;;  %v2660_v12 = vpop.xlane.xlu0 %2659 }
 0xabd   :  { %4454 = vrcp.f32 %v2660_v12  ;;  %4091 = vmatmul.mubr.msk.f32.vlgmr.msra.gmra.mrb[28].mxu0 %vm1618_vm3, %v2682_v8 }
 0xabe   :  { %v4449_v10 = vpop.eup %4448  ;;  %4247 = vmatpush3.bf16.msra.mxu0 %v4246_v11  ;;  %4104 = vmatprep.mubr.msk.f32.mxu0 %vm4634_vm1, %v4633_v45 }
 0xabf   :  { %v4451_v13 = vpop.eup %4450  ;;  %v2687_v14 = vmul.f32 %v4449_v10, %v5179_v27  ;;  %v4381_v17 = vpop.permute.xlu1 %4380  ;;  %4251 = vmatprep.subr.bf16.mxu0 %v4648_v0 }
 0xac0   :  { %v2683_v18 = vmul.f32 %v4451_v13, %v5181_v33  ;;  %v4383_v19 = vunpack.i.h.bf16 %v4381_v17  ;;  %v4382_v20 = vunpack.i.l.bf16 %v4381_v17  ;;  %v4376_v21 = vpop.permute.xlu0 %4375 }
 0xac1   :  { %v4378_v22 = vunpack.i.h.bf16 %v4376_v21  ;;  %v4377_v23 = vunpack.i.l.bf16 %v4376_v21  ;;  %4112 = vmatmul.mubr.msk.f32.vlgmr.msra.gmra.mrb[36].mxu1 %vm1618_vm3, %v2687_v14 }
 0xac2   :  { %v4255_v24 = vpack.c.bf16 %v4383_v19, %v4382_v20  ;;  %4105 = vmatmul.mubr.msk.f32.vlgmr.msra.gmra.mrb[30].mxu0 %vm1618_vm3, %v2683_v18  ;;  %4125 = vmatprep.mubr.msk.f32.mxu1 %vm4634_vm1, %v4633_v45  ;;  %v3482_v19 = vld [vmem:[%s5332_s9 + $0x10] sm:$0xff]  ;;  %v3483_v20 = vld [vmem:[%s5332_s9 + $0x18] sm:$0xff] }
 0xac3   :  { %v4252_v25 = vpack.c.bf16 %v4378_v22, %v4377_v23  ;;  %4118 = vmatprep.mubr.msk.f32.mxu0 %vm4634_vm1, %v4633_v45  ;;  %v4257_v45 = vpack.c.bf16 %v1948_v39, %v1947_v37  ;;  %v4269_v21 = vpack.c.bf16 %v3483_v20, %v3482_v19  ;;  %v3571_v22 = vld [vmem:[%s5333_s10] sm:$0xff]  ;;  %v3572_v23 = vld [vmem:[%s5333_s10 + $0x8] sm:$0xff] }
 0xac4   :  { %4256 = vmatpush3.bf16.msra.mxu1 %v4255_v24  ;;  %v3573_v24 = vld [vmem:[%s5333_s10 + $0x10] sm:$0xff] }
 0xac5   :  { %4253 = vmatpush3.bf16.msra.mxu0 %v4252_v25  ;;  %v4273_v25 = vpack.c.bf16 %v3572_v23, %v3571_v22 }
 0xac6   :  { %v4453_v0 = vpop.eup %4452  ;;  %4258 = vmatprep.subr.bf16.mxu0 %v4257_v45 }
 0xac7   :  { %v4455_v27 = vpop.eup %4454  ;;  %v2688_v33 = vmul.f32 %v4453_v0, %v5189_v40  ;;  %v3574_v0 = vld [vmem:[%s5333_s10 + $0x18] sm:$0xff] }
 0xac8   :  { %v2684_v34 = vmul.f32 %v4455_v27, %v5191_v41  ;;  %v4277_v27 = vpack.c.bf16 %v3574_v0, %v3573_v24 }
 0xac9   :  { %4126 = vmatmul.mubr.msk.f32.vlgmr.msra.gmra.mrb[38].mxu1 %vm1618_vm3, %v2688_v33  ;;  %v3575_v33 = vld [vmem:[%s5333_s10 + $0x20] sm:$0xff] }
 0xaca   :  { %4119 = vmatmul.mubr.msk.f32.vlgmr.msra.gmra.mrb[32].mxu0 %vm1618_vm3, %v2684_v34  ;;  %v3576_v34 = vld [vmem:[%s5333_s10 + $0x28] sm:$0xff] }
 0xacb   :  { %4260 = vmatpush3.bf16.msra.mxu0 %v4257_v45 }
 0xacc   :  { %4262 = vmatprep.subr.bf16.mxu0 %v4261_v47 }
 0xacf   :  { %4264 = vmatpush3.bf16.msra.mxu0 %v4261_v47 }
 0xad0   :  { %4274 = vmatprep.subr.bf16.mxu0 %v4273_v25 }
 0xb38   :  { %v2764_v35 = vpop.f32.mrb[30].mxu1 }
 0xb39   :  { %v4078_v49 = vpop.f32.mrb[31].mxu1 }
 0xb3f   :  { %v2843_v51 = vpop.f32.mrb[32].mxu1 }
 0xb40   :  { %v4085_v36 = vpop.f32.mrb[33].mxu1 }
 0xb8c   :  { %v3001_v48 = vpop.f32.mrb[34].mxu1 }
 0xb8d   :  { %3325 = vrot.lane.b32.xlu1 %v3001_v48, %s4629_s22  ;;  %v4099_v40 = vpop.f32.mrb[35].mxu1 }
 0xb90   :  { %v2922_v41 = vpop.f32.mrb[28].mxu0 }
 0xb91   :  { %3323 = vrot.lane.b32.xlu0 %v2922_v41, %s4629_s22  ;;  %v4092_v50 = vpop.f32.mrb[29].mxu0 }
 0xb94   :  { %v3159_v52 = vpop.f32.mrb[36].mxu1 }
 0xb95   :  { %v3080_v44 = vpop.f32.mrb[30].mxu0  ;;  %3333 = vrot.lane.b32.xlu1 %v3159_v52, %s4646_s14  ;;  %v4113_v53 = vpop.f32.mrb[37].mxu1 }
 0xb96   :  { %3331 = vrot.lane.b32.xlu0 %v3080_v44, %s4646_s14  ;;  %v4106_v42 = vpop.f32.mrb[31].mxu0  ;;  %v3470_v44 = vsub.s32 4, %v4813_v28  ;;  %v3476_v53 = vsub.s32 5, %v4813_v28 }
 0xb9c   :  { %v3317_v54 = vpop.f32.mrb[38].mxu1 }
 0xb9d   :  { %v3238_v55 = vpop.f32.mrb[32].mxu0  ;;  %3341 = vrot.lane.b32.xlu1 %v3317_v54, %s4647_s5  ;;  %v4127_v56 = vpop.f32.mrb[39].mxu1  ;;  %v4460_v54 = vld [vmem:[#allocation7] sm:$0xff] }
 0xb9e   :  { %3339 = vrot.lane.b32.xlu0 %v3238_v55, %s4647_s5  ;;  %v4120_v38 = vpop.f32.mrb[33].mxu0  ;;  %v3471_v55 = vrot.slane %v4460_v54, %v3470_v44 }
 0xbff   :  { %v3326_v57 = vpop.permute.xlu1 %3325 }
 0xc00   :  { %v3346_v62 = vsel %vm268_vm2, %v2843_v51, %v3326_v57 }
 0xc03   :  { %v3324_v32 = vpop.permute.xlu0 %3323 }
 0xc04   :  { %v3345_v58 = vsel %vm268_vm2, %v2764_v35, %v3324_v32  ;;  %v4281_v35 = vpack.c.bf16 %v3576_v34, %v3575_v33  ;;  %v3477_v32 = vrot.slane %v4460_v54, %v3476_v53 }
 0xc07   :  { %v3334_v59 = vpop.permute.xlu1 %3333 }
 0xc08   :  { %v3332_v60 = vpop.permute.xlu0 %3331  ;;  %v3348_v2 = vsel %vm1618_vm3, %v3346_v62, %v3334_v59 }
 0xc09   :  { %v3347_v63 = vsel %vm1618_vm3, %v3345_v58, %v3332_v60 }
 0xc0f   :  { %v3342_v61 = vpop.permute.xlu1 %3341 }
 0xc10   :  { %v3340_v1 = vpop.permute.xlu0 %3339  ;;  %v3350_v3 = vsel %vm1621_vm4, %v3348_v2, %v3342_v61  ;;  %v3578_v2 = vld [vmem:[%s5333_s10 + $0x38] sm:$0xff] }
 0xc11   :  { %v3349_v30 = vsel %vm1621_vm4, %v3347_v63, %v3340_v1  ;;  %v3577_v1 = vld [vmem:[%s5333_s10 + $0x30] sm:$0xff]  ;;  %s4649_s10 = smov [#allocation13]  }
 0xc12   :  { %4136 = vmatprep.mubr.msk.f32.mxu0 %vm128_vm0, %v3349_v30  ;;  %v4285_v30 = vpack.c.bf16 %v3578_v2, %v3577_v1  ;;  %s3674_s25 = sshll.u32 %s4649_s10, 4  ;;  %s3675_s25 = int_to_ptr.vmem [resolvable:$true] %s3674_s25 }
 0xc13   :  { %4137 = vmatmul.mubr.msk.f32.vlgmr.msra.gmra.mrb[34].mxu0 %vm128_vm0, %v3350_v3  ;;  %v3487_v3 = vrot.slane %v5059_v31, %v1749_v16  ;;  %s4593_s26 = scalar_lea.vmem %s3675_s25, 256  ;;  %p4598_p7 = scmp.lt.s32.totalorder %s3675_s25, %s3675_s25 }
 0xc14   :  { %4276 = vmatpush3.bf16.msra.mxu0 %v4273_v25  ;;  %p4594_p6 = scmp.ne.s32.totalorder %s3675_s25, %s4593_s26  ;;  %p4599_p8 = scmp.lt.s32.totalorder %s4593_s26, %s4593_s26 }
 0xc15   :  { %4278 = vmatprep.subr.bf16.mxu0 %v4277_v27 }
 0xc16   :  { %p4600_p9 = por %p4599_p8, %p4598_p7 }
 0xc18   :  { %4280 = vmatpush3.bf16.msra.mxu0 %v4277_v27  ;;  %p4601_p10 = pnand %p4600_p9, %p4594_p6 }
 0xc19   :  { %4282 = vmatprep.subr.bf16.mxu0 %v4281_v35 }
 0xc1c   :  { %4284 = vmatpush3.bf16.msra.mxu0 %v4281_v35 }
 0xc1d   :  { %4286 = vmatprep.subr.bf16.mxu0 %v4285_v30 }
 0xc20   :  { %4288 = vmatpush3.bf16.msra.mxu0 %v4285_v30 }
 0xce6   :  { %v4138_v5 = vpop.f32.mrb[34].mxu0 }
 0xce7   :  { %v3433_v6 = vadd.f32 %v4138_v5, %v3354_v4  ;;  %v3427_v7 = vpop.f32.mrb[35].mxu0 }
 0xce8   :  { %v3428_v8 = vadd.f32 %v3427_v7, %v3354_v4 }
 0xce9   :  { %v5251_v9 = vadd.f32 %v3433_v6, %v5053_v29  ;;  %v3481_v29 = vld [vmem:[%s5332_s9 + $0x8] sm:$0xff] }
 0xcea   :  { %v3436_v11 = vadd.f32 %v3428_v8, %v5049_v26  ;;  %v3480_v26 = vld [vmem:[%s5332_s9] sm:$0xff] }
 0xceb   :  { %v3441_v12 = vsel %vm128_vm0, %v5251_v9, 0.0  ;;  %v3447_v15 = vmul.f32 %v5251_v9, %v5251_v9  ;;  %v4265_v18 = vpack.c.bf16 %v3481_v29, %v3480_v26 }
 0xcec   :  { %3442 = vadd.xlane.f32.xlu1 %v3441_v12  ;;  %v3438_v10 = vsel %vm128_vm0, %v3436_v11, 0.0  ;;  %v3446_v13 = vmul.f32 %v3436_v11, %v3436_v11 }
 0xced   :  { %3439 = vadd.xlane.f32.xlu0 %v3438_v10  ;;  %v3451_v17 = vsel %vm128_vm0, %v3447_v15, 0.0  ;;  %4266 = vmatprep.subr.bf16.mxu1 %v4265_v18 }
 0xcee   :  { %v3448_v14 = vsel %vm128_vm0, %v3446_v13, 0.0  ;;  %4268 = vmatpush3.bf16.msra.mxu1 %v4265_v18 }
 0xcef   :  { %4270 = vmatprep.subr.bf16.mxu1 %v4269_v21 }
 0xcf1   :  { %3449 = vadd.xlane.f32.xlu0 %v3448_v14 }
 0xcf2   :  { %4272 = vmatpush3.bf16.msra.mxu1 %v4269_v21 }
 0xcf5   :  { %3452 = vadd.xlane.f32.xlu0 %v3451_v17 }
 0xd79   :  { %v3443_v36 = vpop.xlane.xlu1 %3442 }
 0xd7a   :  { %v3440_v49 = vpop.xlane.xlu0 %3439  ;;  %v3445_v39 = vmul.f32 0.03125, %v3443_v36 }
 0xd7b   :  { %v3444_v51 = vmul.f32 0.03125, %v3440_v49 }
 0xd7c   :  { %v3457_v48 = vmul.f32 %v3445_v39, %v3445_v39  ;;  %v3461_v57 = vsub.f32 %v5251_v9, %v3445_v39 }
 0xd7d   :  { %v3456_v43 = vmul.f32 %v3444_v51, %v3444_v51  ;;  %v3460_v42 = vsub.f32 %v3436_v11, %v3444_v51  ;;  %v3582_v11 = vrot.slane %v5059_v31, %v3470_v44 }
 0xd7e   :  { %v3450_v37 = vpop.xlane.xlu0 %3449 }
 0xd7f   :  { %v3454_v45 = vmul.f32 0.03125, %v3450_v37 }
 0xd81   :  { %v3458_v46 = vsub.f32 %v3454_v45, %v3456_v43 }
 0xd82   :  { %v3453_v47 = vpop.xlane.xlu0 %3452 }
 0xd83   :  { %v3462_v40 = vadd.f32 1e-05, %v3458_v46  ;;  %v3455_v41 = vmul.f32 0.03125, %v3453_v47 }
 0xd85   :  { %4456 = vrsqrt.f32 %v3462_v40  ;;  %v3459_v50 = vsub.f32 %v3455_v41, %v3457_v48 }
 0xd87   :  { %v3463_v52 = vadd.f32 1e-05, %v3459_v50 }
 0xd89   :  { %4458 = vrsqrt.f32 %v3463_v52 }
 0xd8f   :  { %v4457_v56 = vpop.eup %4456 }
 0xd90   :  { %v3466_v38 = vmul.f32 %v4457_v56, %v3460_v42 }
 0xd92   :  { %v3472_v59 = vmul.f32 %v3471_v55, %v3466_v38 }
 0xd93   :  { %v4459_v60 = vpop.eup %4458 }
 0xd94   :  { %v3467_v58 = vmul.f32 %v4459_v60, %v3461_v57  ;;  %v3478_v61 = vadd.f32 %v3477_v32, %v3472_v59 }
 0xd96   :  { %v3473_v62 = vmul.f32 %v3471_v55, %v3467_v58  ;;  %4147 = vmatprep.mubr.msk.f32.mxu1 %vm128_vm0, %v3478_v61 }
 0xd98   :  { %v3479_v63 = vadd.f32 %v3477_v32, %v3473_v62 }
 0xd9a   :  { %4148 = vmatmul.mubr.msk.f32.vlgmr.msra.gmra.mrb[40].mxu1 %vm128_vm0, %v3479_v63 }
 0xe6d   :  { %v4149_v4 = vpop.f32.mrb[40].mxu1 }
 0xe6e   :  { %v3566_v5 = vadd.f32 %v4149_v4, %v3487_v3  ;;  %v3560_v6 = vpop.f32.mrb[41].mxu1 }
 0xe6f   :  { %v3561_v7 = vadd.f32 %v3560_v6, %v3487_v3 }
 0xe70   :  { %v3570_v9 = vmax.f32 %v3566_v5, 0.0 }
 0xe71   :  { %v3569_v8 = vmax.f32 %v3561_v7, 0.0 }
 0xe73   :  { %4166 = vmatprep.mubr.msk.f32.mxu0 %vm3583_vm6, %v3569_v8 }
 0xe74   :  { %4167 = vmatmul.mubr.msk.f32.vlgmr.msra.gmra.mrb[36].mxu0 %vm3583_vm6, %v3570_v9 }
 0xf47   :  { %v4168_v12 = vpop.f32.mrb[36].mxu0 }
 0xf48   :  { %v3662_v10 = vadd.f32 %v4168_v12, %v3582_v11  ;;  %v3656_v13 = vpop.f32.mrb[37].mxu0 }
 0xf49   :  { %v3657_v14 = vadd.f32 %v3656_v13, %v3582_v11 }
 0xf4a   :  { %v3666_v28 = vadd.f32 %v3662_v10, %v3479_v63 }
 0xf4b   :  { %v3665_v15 = vadd.f32 %v3657_v14, %v3478_v61 }
 0xf4c   :  { %3668 = vst.msk [vmem:[#allocation13 + $0x8] sm:$0xff] %vm128_vm0, %v3666_v28 }
 0xf4d   :  { %3667 = vst.msk [vmem:[#allocation13] sm:$0xff] %vm128_vm0, %v3665_v15 }
 0xf4e   :  { %4604 = shalt.err (!%p4601_p10)
}
 0xf4f   :  { %s4605_s4 = scalar_lea.hbm %s5334_s11, 256 }
 0xf50   :  { %p4606_p11 = scmp.ne.s32.totalorder %s5334_s11, %s4605_s4  ;;  %p4609_p12 = scmp.lt.u32.totalorder %s4605_s4, %s5334_s11 }
 0xf52   :  { %p4611_p13 = pnand %p4609_p12, %p4606_p11 }
 0xf54   :  { %4614 = shalt.err (!%p4611_p13)
}
 0xf55   :  { %3680 = dma.vmem_to_hbm [thread:$0]  %s3675_s25, 256, %s5334_s11, [#allocation4], %s4628_s18, %s4628_s18, %s4629_s22  }
 0xf56   :  { %4623 = dma.done.wait [#allocation4], 256  }
 0xf57   :  { %4624 = vsyncadd [#allocation4], 4294967040 }
 0xf58   :  { %3684 = vsyncpa [#allocation3], 1 }
 0xf59   :  { %3685 = vsyncpa [#allocation6], 1 }
 0xf5a   :  { %3686 = vsyncpa [#allocation9], 1 }
 0xf5b   :  { %3687 = vsyncpa [#allocation12], 1 }
 0xf5c   :  { %3688 = vsyncpa [#allocation4], 1 }

</bundles_post_ra>
